<compile_context>
chip_gen: v6e
topology: v6e:2x2x1
jax: 0.10.0
libtpu: 0.0.40
codegen_flags: <defaults>
</compile_context>

<pallas_src>
import functools

import jax
import jax.numpy as jnp
from jax.experimental import pallas as pl
from jax.experimental.pallas import tpu as pltpu

EPS = 1e-5
MAX_POS_EMB = 512
NEG_BIG = 1e9
VMEM_LIMIT = 64 * 1024 * 1024


def _round_up(v, m):
    return ((v + m - 1) // m) * m


# ----------------------------- in-kernel helpers -----------------------------

def _layernorm(x, g, b):
    mu = jnp.mean(x, axis=-1, keepdims=True)
    var = jnp.mean((x - mu) ** 2, axis=-1, keepdims=True)
    return (x - mu) * jax.lax.rsqrt(var + EPS) * g + b


def _ff_sublayer(x, g, b, w1, b1, w2, b2):
    """x + 0.5 * Linear2(SiLU(Linear1(LN(x)))); bf16 MXU inputs, f32 accumulation."""
    y = _layernorm(x, g, b).astype(jnp.bfloat16)
    h = jnp.dot(y, w1, preferred_element_type=jnp.float32) + b1
    h = (h * jax.nn.sigmoid(h)).astype(jnp.bfloat16)
    o = jnp.dot(h, w2, preferred_element_type=jnp.float32) + b2
    return x + 0.5 * o


# ----------------------------- fused ConformerBlock kernel -------------------

def conformer_block_kernel(
    # inputs
    x_ref, mrow_ref, mcol_ref,
    f1g_ref, f1b_ref, f1w1_ref, f1b1_ref, f1w2_ref, f1b2_ref,
    ag_ref, ab_ref, wqkv_ref, wo_ref, bo_ref, rel_ref,
    cg_ref, cb_ref, pw1w_ref, pw1b_ref, dww_ref, bns_ref, bnsh_ref, pw2w_ref, pw2b_ref,
    f2g_ref, f2b_ref, f2w1_ref, f2b1_ref, f2w2_ref, f2b2_ref,
    plg_ref, plb_ref,
    # output
    o_ref,
):
    f32 = jnp.float32
    bf16 = jnp.bfloat16

    x = x_ref[0]                                   # (T, C) float32 residual stream
    T = x.shape[0]

    # ---------------- FF1 (half residual) ----------------
    x = _ff_sublayer(x, f1g_ref[...], f1b_ref[...], f1w1_ref[...], f1b1_ref[...],
                     f1w2_ref[...], f1b2_ref[...])

    # ---------------- MHSA with Shaw relative-position bias ----------------
    Wl, Dh = rel_ref.shape                         # Wl is a multiple of 128 (host-padded)
    HD = wo_ref.shape[0]                           # heads * dim_head
    H = HD // Dh
    nbits = (T - 1).bit_length()
    Wp = T + (1 << nbits) - 1                      # logical width needed by the skew

    y = _layernorm(x, ag_ref[...], ab_ref[...]).astype(bf16)
    # fused QKV projection (attention scale pre-folded into the q weights), K = C (full fill)
    qkv = jnp.dot(y, wqkv_ref[...], preferred_element_type=f32)        # (T, 3*HD)

    # additive mask bias, computed once (0 where valid, -NEG_BIG where masked)
    mask_bias = (mcol_ref[0] * mrow_ref[0] - 1.0) * NEG_BIG            # (T, T)

    row_ids = jax.lax.broadcasted_iota(jnp.int32, (T, 1), 0)
    row_shift = (T - 1) - row_ids                                      # per-row skew amount
    rel = rel_ref[...]                                                 # (Wl, Dh) bf16

    head_outs = []
    # TODO(synk): for large T / many heads, turn this into a lax.fori_loop with q-row
    #             tiling so the per-head (T, T) temporaries do not stay live across the
    #             statically unrolled loop (vreg-spill risk at production sizes).
    for h in range(H):
        qh = qkv[:, h * Dh:(h + 1) * Dh].astype(bf16)
        kh = qkv[:, HD + h * Dh:HD + (h + 1) * Dh].astype(bf16)
        vh = qkv[:, 2 * HD + h * Dh:2 * HD + (h + 1) * Dh].astype(bf16)

        # One fused MXU issue per head: q_h (T,Dh) x [rel ; k_h]^T (Dh, Wl+T)
        #   columns [0, Wp)        -> rel-pos bias P (pre-skew)
        #   columns [Wl, Wl+T)     -> attention scores (Wl % 128 == 0 => lane-aligned slice)
        rhs = jnp.concatenate([rel, kh], axis=0)                       # (Wl + T, Dh)
        fused = jax.lax.dot_general(qh, rhs, (((1,), (1,)), ((), ())),
                                    preferred_element_type=f32)        # (T, Wl + T)
        dots = fused[:, Wl:Wl + T] + mask_bias

        # Shaw rel-pos "skew":  pos[i, j] = P[i, j + (T-1-i)]  via log2(T) conditional
        # static lane slices.  No (T, T, Dh) tensor is ever materialized.
        p = fused[:, :Wp]
        cur_w = Wp
        for bit in range(nbits):
            amt = 1 << bit
            cur_w -= amt
            take = ((row_shift >> bit) & 1) == 1
            p = jnp.where(take, p[:, amt:amt + cur_w], p[:, :cur_w])
        dots = dots + p                                                # p is (T, T) now

        dots = dots - jnp.max(dots, axis=-1, keepdims=True)
        e = jnp.exp(dots)
        attn = e * pl.reciprocal(jnp.sum(e, axis=-1, keepdims=True), approx=True)
        head_outs.append(jnp.dot(attn.astype(bf16), vh, preferred_element_type=f32))

    # single full-width output projection over concatenated heads (K = HD, full fill)
    o_heads = jnp.concatenate(head_outs, axis=1).astype(bf16)          # (T, HD)
    x = x + jnp.dot(o_heads, wo_ref[...], preferred_element_type=f32) + bo_ref[...]

    # ---------------- Convolution module ----------------
    inner = pw2w_ref.shape[0]
    K = dww_ref.shape[0]
    pad_l = K // 2                                 # matches lucidrains calc_same_padding

    y = _layernorm(x, cg_ref[...], cb_ref[...]).astype(bf16)
    hcat = jnp.dot(y, pw1w_ref[...], preferred_element_type=f32) + pw1b_ref[...]  # (T, 2*inner)
    g = hcat[:, :inner] * jax.nn.sigmoid(hcat[:, inner:])              # GLU over channels

    # Depthwise conv entirely in registers: K statically shifted copies of g (zero-filled
    # at the boundaries) times per-channel taps on the VPU.  No VMEM pad-buffer round-trip.
    dww = dww_ref[...]                                                 # (K, inner) f32
    z = jnp.zeros_like(g)
    for k in range(K):
        s = k - pad_l
        if s == 0:
            shifted = g
        elif s > 0:
            shifted = jnp.concatenate([g[s:, :], jnp.zeros((s, inner), f32)], axis=0)
        else:
            shifted = jnp.concatenate([jnp.zeros((-s, inner), f32), g[:T + s, :]], axis=0)
        z = z + shifted * dww[k:k + 1, :]
    z = z * bns_ref[...] + bnsh_ref[...]           # folded BatchNorm(eval) + depthwise bias
    z = z * jax.nn.sigmoid(z)                      # swish
    x = x + jnp.dot(z.astype(bf16), pw2w_ref[...],
                    preferred_element_type=f32) + pw2b_ref[...]

    # ---------------- FF2 (half residual) + post LayerNorm ----------------
    x = _ff_sublayer(x, f2g_ref[...], f2b_ref[...], f2w1_ref[...], f2b1_ref[...],
                     f2w2_ref[...], f2b2_ref[...])
    o_ref[0] = _layernorm(x, plg_ref[...], plb_ref[...])


# ----------------------------- classifier kernel -----------------------------

def linear_kernel(x_ref, w_ref, b_ref, o_ref):
    # x is already bf16 (cast on the wrapper side: the classifier is HBM-bandwidth bound)
    o_ref[...] = jnp.dot(x_ref[...], w_ref[...],
                         preferred_element_type=jnp.float32) + b_ref[...]


# ----------------------------- pallas_call wrappers --------------------------

def _const_spec(shape):
    zeros = (0,) * len(shape)
    return pl.BlockSpec(shape, lambda n, _z=zeros: _z)


def conformer_block_apply(x, mask_row, mask_col, ops):
    N, T, C = x.shape
    in_specs = [
        pl.BlockSpec((1, T, C), lambda n: (n, 0, 0)),
        pl.BlockSpec((1, 1, T), lambda n: (n, 0, 0)),
        pl.BlockSpec((1, T, 1), lambda n: (n, 0, 0)),
    ] + [_const_spec(tuple(o.shape)) for o in ops]
    # TODO(synk): the resident weights are double-buffered by the default pipeline even
    #             though their block index never changes; pl.Buffered(1) would halve
    #             their VMEM footprint (left at default for lowering safety here).
    return pl.pallas_call(
        conformer_block_kernel,
        out_shape=jax.ShapeDtypeStruct((N, T, C), jnp.float32),
        grid=(N,),
        in_specs=in_specs,
        out_specs=pl.BlockSpec((1, T, C), lambda n: (n, 0, 0)),
        input_output_aliases={0: 0},               # residual stream updated in place
        compiler_params=pltpu.CompilerParams(
            dimension_semantics=("parallel",),
            vmem_limit_bytes=VMEM_LIMIT),
    )(x, mask_row, mask_col, *ops)


def final_linear(x2d_bf16, w_pad, b_pad):
    M, C = x2d_bf16.shape
    n_pad = w_pad.shape[1]
    tm = 512 if M >= 512 else _round_up(M, 8)
    Mp = _round_up(M, tm)
    if Mp != M:
        x2d_bf16 = jnp.pad(x2d_bf16, ((0, Mp - M), (0, 0)))
    out = pl.pallas_call(
        linear_kernel,
        out_shape=jax.ShapeDtypeStruct((Mp, n_pad), jnp.float32),
        grid=(Mp // tm,),
        in_specs=[
            pl.BlockSpec((tm, C), lambda i: (i, 0)),
            pl.BlockSpec((C, n_pad), lambda i: (0, 0)),
            pl.BlockSpec((1, n_pad), lambda i: (0, 0)),
        ],
        out_specs=pl.BlockSpec((tm, n_pad), lambda i: (i, 0)),
        compiler_params=pltpu.CompilerParams(
            dimension_semantics=("parallel",),
            vmem_limit_bytes=VMEM_LIMIT),
    )(x2d_bf16, w_pad, b_pad)
    return out[:M]


# ----------------------------- parameter preparation (host, once) ------------

def _prep_block_operands(bp, T):
    """Fold / fuse per-block parameters into the layout the fused kernel expects."""
    bf16 = jnp.bfloat16

    def ff_ops(p):
        return (p['ln_g'], p['ln_b'], p['w1'].astype(bf16), p['b1'],
                p['w2'].astype(bf16), p['b2'])

    at = bp['attn']
    heads, C, Dh = at['wq'].shape
    HD = heads * Dh
    scale = Dh ** -0.5
    wq = (at['wq'] * scale).transpose(1, 0, 2).reshape(C, HD)      # scale folded into q
    wk = at['wk'].transpose(1, 0, 2).reshape(C, HD)
    wv = at['wv'].transpose(1, 0, 2).reshape(C, HD)
    wqkv = jnp.concatenate([wq, wk, wv], axis=1).astype(bf16)      # (C, 3*HD)
    wo = at['wo'].reshape(HD, C).astype(bf16)

    # Shaw rel-pos: window the table to the distances reachable at this T, reverse it so
    # the in-kernel skew is a pure left shift, zero-pad the row count so (a) the skew's
    # shrinking slices end at width T and (b) the score block of the fused per-head matmul
    # lands at a 128-aligned lane offset.
    Lc = T - 1
    W = 2 * T - 1
    nbits = Lc.bit_length()
    Wp = T + (1 << nbits) - 1
    Wl = _round_up(Wp, 128)
    start = MAX_POS_EMB - Lc
    rel_win = at['rel_table'][start:start + W]                     # (2T-1, Dh)
    rel_rev = jnp.flip(rel_win, axis=0)                            # (2T-1, Dh)
    rel_k = jnp.zeros((Wl, Dh), jnp.float32).at[:W].set(rel_rev).astype(bf16)
    attn_ops = (at['ln_g'], at['ln_b'], wqkv, wo, at['bo'], rel_k)

    cv = bp['conv']
    pw1_w = jnp.concatenate([cv['pw1_wa'], cv['pw1_wb']], axis=1).astype(bf16)  # (C, 2*inner)
    pw1_b = jnp.concatenate([cv['pw1_ba'], cv['pw1_bb']], axis=1)               # (1, 2*inner)
    bn_scale = cv['bn_g'] * jax.lax.rsqrt(cv['bn_v'] + 1e-5)
    bn_shift = (cv['dw_b'] - cv['bn_m']) * bn_scale + cv['bn_b']
    conv_ops = (cv['ln_g'], cv['ln_b'], pw1_w, pw1_b, cv['dw_w'],
                bn_scale, bn_shift, cv['pw2_w'].astype(bf16), cv['pw2_b'])

    pln = bp['post_ln']
    return (ff_ops(bp['ff1']) + attn_ops + conv_ops + ff_ops(bp['ff2'])
            + (pln['ln_g'], pln['ln_b']))


def prepare_decoder_operands(params, T):
    """One-time (per model, per T) host-side folding; keeps weight reshuffles out of the
    steady-state jitted forward."""
    assert T - 1 <= MAX_POS_EMB, "sequence length exceeds the relative-position table"
    block_ops = [_prep_block_operands(bp, T) for bp in params['blocks']]
    C, n_class = params['cls_w'].shape
    n_pad = _round_up(n_class, 128)
    w_pad = jnp.zeros((C, n_pad), jnp.bfloat16).at[:, :n_class].set(
        params['cls_w'].astype(jnp.bfloat16))
    b_pad = jnp.zeros((1, n_pad), jnp.float32).at[:, :n_class].set(params['cls_b'])
    return dict(block_ops=block_ops, cls_w=w_pad, cls_b=b_pad)


# ----------------------------- parameter construction ------------------------

def init_block_params(key, dim, dim_head, heads, ff_mult, conv_kernel_size,
                      conv_expansion=2):
    ks = iter(jax.random.split(key, 48))
    nrm = lambda shape, s=0.1: (s * jax.random.normal(next(ks), shape)).astype(jnp.float32)
    inner = conv_expansion * dim
    hid = ff_mult * dim

    def ff_params():
        return dict(ln_g=1.0 + nrm((1, dim), 0.05), ln_b=nrm((1, dim), 0.05),
                    w1=nrm((dim, hid)), b1=nrm((1, hid), 0.02),
                    w2=nrm((hid, dim)), b2=nrm((1, dim), 0.02))

    ff1 = ff_params()
    attn = dict(
        ln_g=1.0 + nrm((1, dim), 0.05), ln_b=nrm((1, dim), 0.05),
        wq=nrm((heads, dim, dim_head)), wk=nrm((heads, dim, dim_head)),
        wv=nrm((heads, dim, dim_head)), wo=nrm((heads, dim_head, dim)),
        bo=nrm((1, dim), 0.02),
        rel_table=nrm((2 * MAX_POS_EMB + 1, dim_head)),
    )
    conv = dict(
        ln_g=1.0 + nrm((1, dim), 0.05), ln_b=nrm((1, dim), 0.05),
        pw1_wa=nrm((dim, inner)), pw1_ba=nrm((1, inner), 0.02),
        pw1_wb=nrm((dim, inner)), pw1_bb=nrm((1, inner), 0.02),
        dw_w=nrm((conv_kernel_size, inner)), dw_b=nrm((1, inner), 0.02),
        bn_g=1.0 + nrm((1, inner), 0.05), bn_b=nrm((1, inner), 0.05),
        bn_m=nrm((1, inner), 0.05), bn_v=1.0 + 0.1 * jnp.abs(nrm((1, inner), 1.0)),
        pw2_w=nrm((inner, dim)), pw2_b=nrm((1, dim), 0.02),
    )
    ff2 = ff_params()
    post_ln = dict(ln_g=1.0 + nrm((1, dim), 0.05), ln_b=nrm((1, dim), 0.05))
    return dict(ff1=ff1, attn=attn, conv=conv, ff2=ff2, post_ln=post_ln)


def init_decoder_params(key, dim, dim_head, heads, depth, conv_kernel_size, n_class):
    keys = jax.random.split(key, depth + 2)
    blocks = [init_block_params(keys[i], dim, dim_head, heads, ff_mult=2,
                                conv_kernel_size=conv_kernel_size) for i in range(depth)]
    cls_w = (0.1 * jax.random.normal(keys[-2], (dim, n_class))).astype(jnp.float32)
    cls_b = (0.02 * jax.random.normal(keys[-1], (1, n_class))).astype(jnp.float32)
    return dict(blocks=blocks, cls_w=cls_w, cls_b=cls_b)


# ----------------------------- decoder forward --------------------------------

@functools.partial(jax.jit, static_argnames=("n_class",))
def conformer_decoder_forward(x_tnc, t_length, prepared, *, n_class):
    """x_tnc: (T, N, C) float32, t_length: (N,) int32.
    Returns (out, t_length, seq_out) matching the PyTorch namedtuple fields."""
    T, N, C = x_tnc.shape
    x = jnp.transpose(x_tnc, (1, 0, 2)).astype(jnp.float32)            # (N, T, C)

    # _make_video_mask: row mask (queries) and column mask (keys) prepared host-side so
    # the kernel never reshapes 1-D vectors.
    mask = (jnp.arange(T)[None, :] < t_length[:, None]).astype(jnp.float32)  # (N, T)
    mask_row = mask[:, None, :]                                         # (N, 1, T)
    mask_col = mask[:, :, None]                                         # (N, T, 1)

    for ops in prepared['block_ops']:
        x = conformer_block_apply(x, mask_row, mask_col, ops)

    x = jnp.transpose(x, (1, 0, 2))                                     # (T, N, C)
    seq_out = x

    x2d = x.reshape(T * N, C).astype(jnp.bfloat16)
    out = final_linear(x2d, prepared['cls_w'], prepared['cls_b'])[:, :n_class]
    out = out.reshape(T, N, n_class)
    return out, t_length, seq_out


# ----------------------------- main -------------------------------------------

if __name__ == "__main__":
    T, N, C = 8, 2, 32          # seq, batch, dim
    heads, dim_head = 2, 16
    depth = 2
    conv_kernel_size = 3
    n_class = 10

    key = jax.random.PRNGKey(0)
    kx, kp = jax.random.split(key)
    x = jax.random.normal(kx, (T, N, C), dtype=jnp.float32)
    t_length = jnp.array([T, 5], dtype=jnp.int32)

    params = init_decoder_params(kp, C, dim_head, heads, depth, conv_kernel_size, n_class)
    prepared = prepare_decoder_operands(params, T)      # host-side folding, once per model

    out, t_len, seq_out = conformer_decoder_forward(x, t_length, prepared, n_class=n_class)
    jax.block_until_ready((out, t_len, seq_out))

    assert out.shape == (T, N, n_class)
    assert seq_out.shape == (T, N, C)
    print("KERNEL_OK")
</pallas_src>

<mosaic_0001>
module attributes {stable_mosaic.version = 11 : i64} {
  func.func @linear_kernel(%arg0: i32, %arg1: memref<16x32xbf16, #tpu.memory_space<vmem>>, %arg2: memref<32x128xbf16, #tpu.memory_space<vmem>>, %arg3: memref<1x128xf32, #tpu.memory_space<vmem>>, %arg4: memref<16x128xf32, #tpu.memory_space<vmem>>) attributes {dimension_semantics = [#tpu.dimension_semantics<parallel>], iteration_bounds = array<i64: 1>, scalar_prefetch = 0 : i64, scratch_operands = 0 : i64, tpu.core_type = #tpu.core_type<tc>, window_params = [{transform_indices = @transform_0, window_bounds = array<i64: 16, 32>}, {pipeline_mode = #tpu.pipeline_mode<synchronous>, transform_indices = @transform_1, window_bounds = array<i64: 32, 128>}, {pipeline_mode = #tpu.pipeline_mode<synchronous>, transform_indices = @transform_2, window_bounds = array<i64: 1, 128>}, {transform_indices = @transform_3, window_bounds = array<i64: 16, 128>}]} {
    %c0 = arith.constant 0 : index
    %c0_0 = arith.constant 0 : index
    %0 = vector.load %arg1[%c0, %c0_0] : memref<16x32xbf16, #tpu.memory_space<vmem>>, vector<16x32xbf16>
    %c0_1 = arith.constant 0 : index
    %c0_2 = arith.constant 0 : index
    %1 = vector.load %arg2[%c0_1, %c0_2] : memref<32x128xbf16, #tpu.memory_space<vmem>>, vector<32x128xbf16>
    %cst = arith.constant dense<0.000000e+00> : vector<16x128xf32>
    %2 = tpu.matmul %0, %1, %cst {dimension_numbers = #tpu.dot_dimension_numbers<[1], [0], [0], [1], [0, 0, 1, 1], [], []>} : vector<16x32xbf16>, vector<32x128xbf16>, vector<16x128xf32> -> vector<16x128xf32>
    %c0_3 = arith.constant 0 : index
    %c0_4 = arith.constant 0 : index
    %3 = vector.load %arg3[%c0_3, %c0_4] : memref<1x128xf32, #tpu.memory_space<vmem>>, vector<1x128xf32>
    %4 = vector.broadcast %3 : vector<1x128xf32> to vector<16x128xf32>
    %5 = arith.addf %2, %4 : vector<16x128xf32>
    %c0_5 = arith.constant 0 : index
    %c0_6 = arith.constant 0 : index
    %6 = vector.load %arg4[%c0_5, %c0_6] : memref<16x128xf32, #tpu.memory_space<vmem>>, vector<16x128xf32>
    tpu.vector_store %arg4[%c0_5, %c0_6], %5 {strides = array<i32>} : memref<16x128xf32, #tpu.memory_space<vmem>>, vector<16x128xf32>,
    return
  }
  func.func @transform_0(%arg0: i32) -> (i32, i32) {
    %c0_i32 = arith.constant 0 : i32
    %c0_i32_0 = arith.constant 0 : i32
    return %arg0, %c0_i32 : i32, i32
  }
  func.func @transform_1(%arg0: i32) -> (i32, i32) {
    %c0_i32 = arith.constant 0 : i32
    %c0_i32_0 = arith.constant 0 : i32
    %c0_i32_1 = arith.constant 0 : i32
    return %c0_i32, %c0_i32_0 : i32, i32
  }
  func.func @transform_2(%arg0: i32) -> (i32, i32) {
    %c0_i32 = arith.constant 0 : i32
    %c0_i32_0 = arith.constant 0 : i32
    %c0_i32_1 = arith.constant 0 : i32
    return %c0_i32, %c0_i32_0 : i32, i32
  }
  func.func @transform_3(%arg0: i32) -> (i32, i32) {
    %c0_i32 = arith.constant 0 : i32
    %c0_i32_0 = arith.constant 0 : i32
    return %arg0, %c0_i32 : i32, i32
  }
}

module attributes {stable_mosaic.version = 11 : i64} {
  func.func @conformer_block_kernel(%arg0: i32, %arg1: memref<1x8x32xf32, #tpu.memory_space<vmem>>, %arg2: memref<1x1x8xf32, #tpu.memory_space<vmem>>, %arg3: memref<1x8x1xf32, #tpu.memory_space<vmem>>, %arg4: memref<1x32xf32, #tpu.memory_space<vmem>>, %arg5: memref<1x32xf32, #tpu.memory_space<vmem>>, %arg6: memref<32x64xbf16, #tpu.memory_space<vmem>>, %arg7: memref<1x64xf32, #tpu.memory_space<vmem>>, %arg8: memref<64x32xbf16, #tpu.memory_space<vmem>>, %arg9: memref<1x32xf32, #tpu.memory_space<vmem>>, %arg10: memref<1x32xf32, #tpu.memory_space<vmem>>, %arg11: memref<1x32xf32, #tpu.memory_space<vmem>>, %arg12: memref<32x96xbf16, #tpu.memory_space<vmem>>, %arg13: memref<32x32xbf16, #tpu.memory_space<vmem>>, %arg14: memref<1x32xf32, #tpu.memory_space<vmem>>, %arg15: memref<128x16xbf16, #tpu.memory_space<vmem>>, %arg16: memref<1x32xf32, #tpu.memory_space<vmem>>, %arg17: memref<1x32xf32, #tpu.memory_space<vmem>>, %arg18: memref<32x128xbf16, #tpu.memory_space<vmem>>, %arg19: memref<1x128xf32, #tpu.memory_space<vmem>>, %arg20: memref<3x64xf32, #tpu.memory_space<vmem>>, %arg21: memref<1x64xf32, #tpu.memory_space<vmem>>, %arg22: memref<1x64xf32, #tpu.memory_space<vmem>>, %arg23: memref<64x32xbf16, #tpu.memory_space<vmem>>, %arg24: memref<1x32xf32, #tpu.memory_space<vmem>>, %arg25: memref<1x32xf32, #tpu.memory_space<vmem>>, %arg26: memref<1x32xf32, #tpu.memory_space<vmem>>, %arg27: memref<32x64xbf16, #tpu.memory_space<vmem>>, %arg28: memref<1x64xf32, #tpu.memory_space<vmem>>, %arg29: memref<64x32xbf16, #tpu.memory_space<vmem>>, %arg30: memref<1x32xf32, #tpu.memory_space<vmem>>, %arg31: memref<1x32xf32, #tpu.memory_space<vmem>>, %arg32: memref<1x32xf32, #tpu.memory_space<vmem>>, %arg33: memref<1x8x32xf32, #tpu.memory_space<vmem>>) attributes {dimension_semantics = [#tpu.dimension_semantics<parallel>], iteration_bounds = array<i64: 2>, scalar_prefetch = 0 : i64, scratch_operands = 0 : i64, tpu.core_type = #tpu.core_type<tc>, window_params = [{transform_indices = @transform_0, window_bounds = array<i64: 1, 8, 32>}, {transform_indices = @transform_1, window_bounds = array<i64: 1, 1, 8>}, {transform_indices = @transform_2, window_bounds = array<i64: 1, 8, 1>}, {pipeline_mode = #tpu.pipeline_mode<synchronous>, transform_indices = @transform_3, window_bounds = array<i64: 1, 32>}, {pipeline_mode = #tpu.pipeline_mode<synchronous>, transform_indices = @transform_4, window_bounds = array<i64: 1, 32>}, {pipeline_mode = #tpu.pipeline_mode<synchronous>, transform_indices = @transform_5, window_bounds = array<i64: 32, 64>}, {pipeline_mode = #tpu.pipeline_mode<synchronous>, transform_indices = @transform_6, window_bounds = array<i64: 1, 64>}, {pipeline_mode = #tpu.pipeline_mode<synchronous>, transform_indices = @transform_7, window_bounds = array<i64: 64, 32>}, {pipeline_mode = #tpu.pipeline_mode<synchronous>, transform_indices = @transform_8, window_bounds = array<i64: 1, 32>}, {pipeline_mode = #tpu.pipeline_mode<synchronous>, transform_indices = @transform_9, window_bounds = array<i64: 1, 32>}, {pipeline_mode = #tpu.pipeline_mode<synchronous>, transform_indices = @transform_10, window_bounds = array<i64: 1, 32>}, {pipeline_mode = #tpu.pipeline_mode<synchronous>, transform_indices = @transform_11, window_bounds = array<i64: 32, 96>}, {pipeline_mode = #tpu.pipeline_mode<synchronous>, transform_indices = @transform_12, window_bounds = array<i64: 32, 32>}, {pipeline_mode = #tpu.pipeline_mode<synchronous>, transform_indices = @transform_13, window_bounds = array<i64: 1, 32>}, {pipeline_mode = #tpu.pipeline_mode<synchronous>, transform_indices = @transform_14, window_bounds = array<i64: 128, 16>}, {pipeline_mode = #tpu.pipeline_mode<synchronous>, transform_indices = @transform_15, window_bounds = array<i64: 1, 32>}, {pipeline_mode = #tpu.pipeline_mode<synchronous>, transform_indices = @transform_16, window_bounds = array<i64: 1, 32>}, {pipeline_mode = #tpu.pipeline_mode<synchronous>, transform_indices = @transform_17, window_bounds = array<i64: 32, 128>}, {pipeline_mode = #tpu.pipeline_mode<synchronous>, transform_indices = @transform_18, window_bounds = array<i64: 1, 128>}, {pipeline_mode = #tpu.pipeline_mode<synchronous>, transform_indices = @transform_19, window_bounds = array<i64: 3, 64>}, {pipeline_mode = #tpu.pipeline_mode<synchronous>, transform_indices = @transform_20, window_bounds = array<i64: 1, 64>}, {pipeline_mode = #tpu.pipeline_mode<synchronous>, transform_indices = @transform_21, window_bounds = array<i64: 1, 64>}, {pipeline_mode = #tpu.pipeline_mode<synchronous>, transform_indices = @transform_22, window_bounds = array<i64: 64, 32>}, {pipeline_mode = #tpu.pipeline_mode<synchronous>, transform_indices = @transform_23, window_bounds = array<i64: 1, 32>}, {pipeline_mode = #tpu.pipeline_mode<synchronous>, transform_indices = @transform_24, window_bounds = array<i64: 1, 32>}, {pipeline_mode = #tpu.pipeline_mode<synchronous>, transform_indices = @transform_25, window_bounds = array<i64: 1, 32>}, {pipeline_mode = #tpu.pipeline_mode<synchronous>, transform_indices = @transform_26, window_bounds = array<i64: 32, 64>}, {pipeline_mode = #tpu.pipeline_mode<synchronous>, transform_indices = @transform_27, window_bounds = array<i64: 1, 64>}, {pipeline_mode = #tpu.pipeline_mode<synchronous>, transform_indices = @transform_28, window_bounds = array<i64: 64, 32>}, {pipeline_mode = #tpu.pipeline_mode<synchronous>, transform_indices = @transform_29, window_bounds = array<i64: 1, 32>}, {pipeline_mode = #tpu.pipeline_mode<synchronous>, transform_indices = @transform_30, window_bounds = array<i64: 1, 32>}, {pipeline_mode = #tpu.pipeline_mode<synchronous>, transform_indices = @transform_31, window_bounds = array<i64: 1, 32>}, {transform_indices = @transform_32, window_bounds = array<i64: 1, 8, 32>}]} {
    %c0 = arith.constant 0 : index
    %c0_0 = arith.constant 0 : index
    %c0_1 = arith.constant 0 : index
    %0 = vector.load %arg1[%c0, %c0_0, %c0_1] : memref<1x8x32xf32, #tpu.memory_space<vmem>>, vector<1x8x32xf32>
    %1 = vector.shape_cast %0 : vector<1x8x32xf32> to vector<8x32xf32>
    %c0_2 = arith.constant 0 : index
    %c0_3 = arith.constant 0 : index
    %2 = vector.load %arg4[%c0_2, %c0_3] : memref<1x32xf32, #tpu.memory_space<vmem>>, vector<1x32xf32>
    %c0_4 = arith.constant 0 : index
    %c0_5 = arith.constant 0 : index
    %3 = vector.load %arg5[%c0_4, %c0_5] : memref<1x32xf32, #tpu.memory_space<vmem>>, vector<1x32xf32>
    %c0_6 = arith.constant 0 : index
    %c0_7 = arith.constant 0 : index
    %4 = vector.load %arg6[%c0_6, %c0_7] : memref<32x64xbf16, #tpu.memory_space<vmem>>, vector<32x64xbf16>
    %c0_8 = arith.constant 0 : index
    %c0_9 = arith.constant 0 : index
    %5 = vector.load %arg7[%c0_8, %c0_9] : memref<1x64xf32, #tpu.memory_space<vmem>>, vector<1x64xf32>
    %c0_10 = arith.constant 0 : index
    %c0_11 = arith.constant 0 : index
    %6 = vector.load %arg8[%c0_10, %c0_11] : memref<64x32xbf16, #tpu.memory_space<vmem>>, vector<64x32xbf16>
    %c0_12 = arith.constant 0 : index
    %c0_13 = arith.constant 0 : index
    %7 = vector.load %arg9[%c0_12, %c0_13] : memref<1x32xf32, #tpu.memory_space<vmem>>, vector<1x32xf32>
    %cst = arith.constant dense<0.000000e+00> : vector<8xf32>
    %8 = vector.multi_reduction <add>, %1, %cst [1] : vector<8x32xf32> to vector<8xf32>
    %9 = vector.shape_cast %8 : vector<8xf32> to vector<8x1xf32>
    %cst_14 = arith.constant 3.200000e+01 : f32
    %10 = vector.broadcast %cst_14 : f32 to vector<8x1xf32>
    %11 = arith.divf %9, %10 : vector<8x1xf32>
    %12 = vector.broadcast %11 : vector<8x1xf32> to vector<8x32xf32>
    %13 = arith.subf %1, %12 : vector<8x32xf32>
    %14 = arith.mulf %13, %13 : vector<8x32xf32>
    %cst_15 = arith.constant dense<0.000000e+00> : vector<8xf32>
    %15 = vector.multi_reduction <add>, %14, %cst_15 [1] : vector<8x32xf32> to vector<8xf32>
    %16 = vector.shape_cast %15 : vector<8xf32> to vector<8x1xf32>
    %cst_16 = arith.constant 3.200000e+01 : f32
    %17 = vector.broadcast %cst_16 : f32 to vector<8x1xf32>
    %18 = arith.divf %16, %17 : vector<8x1xf32>
    %19 = vector.broadcast %11 : vector<8x1xf32> to vector<8x32xf32>
    %20 = arith.subf %1, %19 : vector<8x32xf32>
    %cst_17 = arith.constant 9.99999974E-6 : f32
    %21 = vector.broadcast %cst_17 : f32 to vector<8x1xf32>
    %22 = arith.addf %18, %21 : vector<8x1xf32>
    %23 = math.rsqrt %22 : vector<8x1xf32>
    %24 = vector.broadcast %23 : vector<8x1xf32> to vector<8x32xf32>
    %25 = arith.mulf %20, %24 : vector<8x32xf32>
    %26 = vector.broadcast %2 : vector<1x32xf32> to vector<8x32xf32>
    %27 = arith.mulf %25, %26 : vector<8x32xf32>
    %28 = vector.broadcast %3 : vector<1x32xf32> to vector<8x32xf32>
    %29 = arith.addf %27, %28 : vector<8x32xf32>
    %30 = arith.truncf %29 : vector<8x32xf32> to vector<8x32xbf16>
    %cst_18 = arith.constant dense<0.000000e+00> : vector<8x64xf32>
    %31 = tpu.matmul %30, %4, %cst_18 {dimension_numbers = #tpu.dot_dimension_numbers<[1], [0], [0], [1], [0, 0, 1, 1], [], []>} : vector<8x32xbf16>, vector<32x64xbf16>, vector<8x64xf32> -> vector<8x64xf32>
    %32 = vector.broadcast %5 : vector<1x64xf32> to vector<8x64xf32>
    %33 = arith.addf %31, %32 : vector<8x64xf32>
    %34 = arith.negf %33 : vector<8x64xf32>
    %35 = math.exp %34 : vector<8x64xf32>
    %cst_19 = arith.constant 1.000000e+00 : f32
    %36 = vector.broadcast %cst_19 : f32 to vector<8x64xf32>
    %37 = arith.addf %36, %35 : vector<8x64xf32>
    %38 = arith.divf %36, %37 : vector<8x64xf32>
    %39 = arith.mulf %33, %38 : vector<8x64xf32>
    %40 = arith.truncf %39 : vector<8x64xf32> to vector<8x64xbf16>
    %cst_20 = arith.constant dense<0.000000e+00> : vector<8x32xf32>
    %41 = tpu.matmul %40, %6, %cst_20 {dimension_numbers = #tpu.dot_dimension_numbers<[1], [0], [0], [1], [0, 0, 1, 1], [], []>} : vector<8x64xbf16>, vector<64x32xbf16>, vector<8x32xf32> -> vector<8x32xf32>
    %42 = vector.broadcast %7 : vector<1x32xf32> to vector<8x32xf32>
    %43 = arith.addf %41, %42 : vector<8x32xf32>
    %cst_21 = arith.constant 5.000000e-01 : f32
    %44 = vector.broadcast %cst_21 : f32 to vector<8x32xf32>
    %45 = arith.mulf %44, %43 : vector<8x32xf32>
    %46 = arith.addf %1, %45 : vector<8x32xf32>
    %c0_22 = arith.constant 0 : index
    %c0_23 = arith.constant 0 : index
    %47 = vector.load %arg10[%c0_22, %c0_23] : memref<1x32xf32, #tpu.memory_space<vmem>>, vector<1x32xf32>
    %c0_24 = arith.constant 0 : index
    %c0_25 = arith.constant 0 : index
    %48 = vector.load %arg11[%c0_24, %c0_25] : memref<1x32xf32, #tpu.memory_space<vmem>>, vector<1x32xf32>
    %cst_26 = arith.constant dense<0.000000e+00> : vector<8xf32>
    %49 = vector.multi_reduction <add>, %46, %cst_26 [1] : vector<8x32xf32> to vector<8xf32>
    %50 = vector.shape_cast %49 : vector<8xf32> to vector<8x1xf32>
    %cst_27 = arith.constant 3.200000e+01 : f32
    %51 = vector.broadcast %cst_27 : f32 to vector<8x1xf32>
    %52 = arith.divf %50, %51 : vector<8x1xf32>
    %53 = vector.broadcast %52 : vector<8x1xf32> to vector<8x32xf32>
    %54 = arith.subf %46, %53 : vector<8x32xf32>
    %55 = arith.mulf %54, %54 : vector<8x32xf32>
    %cst_28 = arith.constant dense<0.000000e+00> : vector<8xf32>
    %56 = vector.multi_reduction <add>, %55, %cst_28 [1] : vector<8x32xf32> to vector<8xf32>
    %57 = vector.shape_cast %56 : vector<8xf32> to vector<8x1xf32>
    %cst_29 = arith.constant 3.200000e+01 : f32
    %58 = vector.broadcast %cst_29 : f32 to vector<8x1xf32>
    %59 = arith.divf %57, %58 : vector<8x1xf32>
    %60 = vector.broadcast %52 : vector<8x1xf32> to vector<8x32xf32>
    %61 = arith.subf %46, %60 : vector<8x32xf32>
    %cst_30 = arith.constant 9.99999974E-6 : f32
    %62 = vector.broadcast %cst_30 : f32 to vector<8x1xf32>
    %63 = arith.addf %59, %62 : vector<8x1xf32>
    %64 = math.rsqrt %63 : vector<8x1xf32>
    %65 = vector.broadcast %64 : vector<8x1xf32> to vector<8x32xf32>
    %66 = arith.mulf %61, %65 : vector<8x32xf32>
    %67 = vector.broadcast %47 : vector<1x32xf32> to vector<8x32xf32>
    %68 = arith.mulf %66, %67 : vector<8x32xf32>
    %69 = vector.broadcast %48 : vector<1x32xf32> to vector<8x32xf32>
    %70 = arith.addf %68, %69 : vector<8x32xf32>
    %71 = arith.truncf %70 : vector<8x32xf32> to vector<8x32xbf16>
    %c0_31 = arith.constant 0 : index
    %c0_32 = arith.constant 0 : index
    %72 = vector.load %arg12[%c0_31, %c0_32] : memref<32x96xbf16, #tpu.memory_space<vmem>>, vector<32x96xbf16>
    %cst_33 = arith.constant dense<0.000000e+00> : vector<8x96xf32>
    %73 = tpu.matmul %71, %72, %cst_33 {dimension_numbers = #tpu.dot_dimension_numbers<[1], [0], [0], [1], [0, 0, 1, 1], [], []>} : vector<8x32xbf16>, vector<32x96xbf16>, vector<8x96xf32> -> vector<8x96xf32>
    %c0_34 = arith.constant 0 : index
    %c0_35 = arith.constant 0 : index
    %c0_36 = arith.constant 0 : index
    %74 = vector.load %arg3[%c0_34, %c0_35, %c0_36] : memref<1x8x1xf32, #tpu.memory_space<vmem>>, vector<1x8x1xf32>
    %75 = vector.shape_cast %74 : vector<1x8x1xf32> to vector<8x1xf32>
    %c0_37 = arith.constant 0 : index
    %c0_38 = arith.constant 0 : index
    %c0_39 = arith.constant 0 : index
    %76 = vector.load %arg2[%c0_37, %c0_38, %c0_39] : memref<1x1x8xf32, #tpu.memory_space<vmem>>, vector<1x1x8xf32>
    %77 = vector.shape_cast %76 : vector<1x1x8xf32> to vector<1x8xf32>
    %78 = vector.broadcast %75 : vector<8x1xf32> to vector<8x8xf32>
    %79 = vector.broadcast %77 : vector<1x8xf32> to vector<8x8xf32>
    %80 = arith.mulf %78, %79 : vector<8x8xf32>
    %cst_40 = arith.constant 1.000000e+00 : f32
    %81 = vector.broadcast %cst_40 : f32 to vector<8x8xf32>
    %82 = arith.subf %80, %81 : vector<8x8xf32>
    %cst_41 = arith.constant 1.000000e+09 : f32
    %83 = vector.broadcast %cst_41 : f32 to vector<8x8xf32>
    %84 = arith.mulf %82, %83 : vector<8x8xf32>
    %85 = tpu.iota {dimensions = array<i32: 0>} : vector<8x1xi32>
    %c7_i32 = arith.constant 7 : i32
    %86 = vector.broadcast %c7_i32 : i32 to vector<8x1xi32>
    %87 = arith.subi %86, %85 : vector<8x1xi32>
    %c0_42 = arith.constant 0 : index
    %c0_43 = arith.constant 0 : index
    %88 = vector.load %arg15[%c0_42, %c0_43] : memref<128x16xbf16, #tpu.memory_space<vmem>>, vector<128x16xbf16>
    %89 = vector.extract_strided_slice %73 {offsets = [0, 0], sizes = [8, 16], strides = [1, 1]} : vector<8x96xf32> to vector<8x16xf32>
    %90 = arith.truncf %89 : vector<8x16xf32> to vector<8x16xbf16>
    %91 = vector.extract_strided_slice %73 {offsets = [0, 32], sizes = [8, 16], strides = [1, 1]} : vector<8x96xf32> to vector<8x16xf32>
    %92 = arith.truncf %91 : vector<8x16xf32> to vector<8x16xbf16>
    %93 = vector.extract_strided_slice %73 {offsets = [0, 64], sizes = [8, 16], strides = [1, 1]} : vector<8x96xf32> to vector<8x16xf32>
    %94 = arith.truncf %93 : vector<8x16xf32> to vector<8x16xbf16>
    %95 = tpu.concatenate %88, %92 in 0 : vector<128x16xbf16>, vector<8x16xbf16> -> vector<136x16xbf16>
    %cst_44 = arith.constant dense<0.000000e+00> : vector<8x136xf32>
    %96 = tpu.matmul %90, %95, %cst_44 {dimension_numbers = #tpu.dot_dimension_numbers<[1], [1], [0], [0], [0, 0, 1, 0], [], []>} : vector<8x16xbf16>, vector<136x16xbf16>, vector<8x136xf32> -> vector<8x136xf32>
    %97 = vector.extract_strided_slice %96 {offsets = [0, 128], sizes = [8, 8], strides = [1, 1]} : vector<8x136xf32> to vector<8x8xf32>
    %98 = arith.addf %97, %84 : vector<8x8xf32>
    %99 = vector.extract_strided_slice %96 {offsets = [0, 0], sizes = [8, 15], strides = [1, 1]} : vector<8x136xf32> to vector<8x15xf32>
    %c0_i32 = arith.constant 0 : i32
    %100 = vector.broadcast %c0_i32 : i32 to vector<8x1xi32>
    %101 = arith.shrsi %87, %100 : vector<8x1xi32>
    %c1_i32 = arith.constant 1 : i32
    %102 = vector.broadcast %c1_i32 : i32 to vector<8x1xi32>
    %103 = arith.andi %101, %102 : vector<8x1xi32>
    %c1_i32_45 = arith.constant 1 : i32
    %104 = vector.broadcast %c1_i32_45 : i32 to vector<8x1xi32>
    %105 = arith.cmpi eq, %103, %104 : vector<8x1xi32>
    %106 = vector.extract_strided_slice %99 {offsets = [0, 1], sizes = [8, 14], strides = [1, 1]} : vector<8x15xf32> to vector<8x14xf32>
    %107 = vector.extract_strided_slice %99 {offsets = [0, 0], sizes = [8, 14], strides = [1, 1]} : vector<8x15xf32> to vector<8x14xf32>
    %108 = vector.shape_cast %105 : vector<8x1xi1> to vector<8x1xi1>
    %109 = vector.broadcast %108 : vector<8x1xi1> to vector<8x14xi1>
    %110 = arith.select %109, %106, %107 : vector<8x14xi1>, vector<8x14xf32>
    %c1_i32_46 = arith.constant 1 : i32
    %111 = vector.broadcast %c1_i32_46 : i32 to vector<8x1xi32>
    %112 = arith.shrsi %87, %111 : vector<8x1xi32>
    %c1_i32_47 = arith.constant 1 : i32
    %113 = vector.broadcast %c1_i32_47 : i32 to vector<8x1xi32>
    %114 = arith.andi %112, %113 : vector<8x1xi32>
    %c1_i32_48 = arith.constant 1 : i32
    %115 = vector.broadcast %c1_i32_48 : i32 to vector<8x1xi32>
    %116 = arith.cmpi eq, %114, %115 : vector<8x1xi32>
    %117 = vector.extract_strided_slice %110 {offsets = [0, 2], sizes = [8, 12], strides = [1, 1]} : vector<8x14xf32> to vector<8x12xf32>
    %118 = vector.extract_strided_slice %110 {offsets = [0, 0], sizes = [8, 12], strides = [1, 1]} : vector<8x14xf32> to vector<8x12xf32>
    %119 = vector.shape_cast %116 : vector<8x1xi1> to vector<8x1xi1>
    %120 = vector.broadcast %119 : vector<8x1xi1> to vector<8x12xi1>
    %121 = arith.select %120, %117, %118 : vector<8x12xi1>, vector<8x12xf32>
    %c2_i32 = arith.constant 2 : i32
    %122 = vector.broadcast %c2_i32 : i32 to vector<8x1xi32>
    %123 = arith.shrsi %87, %122 : vector<8x1xi32>
    %c1_i32_49 = arith.constant 1 : i32
    %124 = vector.broadcast %c1_i32_49 : i32 to vector<8x1xi32>
    %125 = arith.andi %123, %124 : vector<8x1xi32>
    %c1_i32_50 = arith.constant 1 : i32
    %126 = vector.broadcast %c1_i32_50 : i32 to vector<8x1xi32>
    %127 = arith.cmpi eq, %125, %126 : vector<8x1xi32>
    %128 = vector.extract_strided_slice %121 {offsets = [0, 4], sizes = [8, 8], strides = [1, 1]} : vector<8x12xf32> to vector<8x8xf32>
    %129 = vector.extract_strided_slice %121 {offsets = [0, 0], sizes = [8, 8], strides = [1, 1]} : vector<8x12xf32> to vector<8x8xf32>
    %130 = vector.shape_cast %127 : vector<8x1xi1> to vector<8x1xi1>
    %131 = vector.broadcast %130 : vector<8x1xi1> to vector<8x8xi1>
    %132 = arith.select %131, %128, %129 : vector<8x8xi1>, vector<8x8xf32>
    %133 = arith.addf %98, %132 : vector<8x8xf32>
    %cst_51 = arith.constant dense<0xFF800000> : vector<8xf32>
    %134 = vector.multi_reduction <maximumf>, %133, %cst_51 [1] : vector<8x8xf32> to vector<8xf32>
    %135 = vector.shape_cast %134 : vector<8xf32> to vector<8x1xf32>
    %136 = vector.broadcast %135 : vector<8x1xf32> to vector<8x8xf32>
    %137 = arith.subf %133, %136 : vector<8x8xf32>
    %138 = math.exp %137 : vector<8x8xf32>
    %cst_52 = arith.constant dense<0.000000e+00> : vector<8xf32>
    %139 = vector.multi_reduction <add>, %138, %cst_52 [1] : vector<8x8xf32> to vector<8xf32>
    %140 = vector.shape_cast %139 : vector<8xf32> to vector<8x1xf32>
    %141 = tpu.reciprocal %140 {approx = true} : vector<8x1xf32> -> vector<8x1xf32>
    %142 = vector.broadcast %141 : vector<8x1xf32> to vector<8x8xf32>
    %143 = arith.mulf %138, %142 : vector<8x8xf32>
    %144 = arith.truncf %143 : vector<8x8xf32> to vector<8x8xbf16>
    %cst_53 = arith.constant dense<0.000000e+00> : vector<8x16xf32>
    %145 = tpu.matmul %144, %94, %cst_53 {dimension_numbers = #tpu.dot_dimension_numbers<[1], [0], [0], [1], [0, 0, 1, 1], [], []>} : vector<8x8xbf16>, vector<8x16xbf16>, vector<8x16xf32> -> vector<8x16xf32>
    %146 = vector.extract_strided_slice %73 {offsets = [0, 16], sizes = [8, 16], strides = [1, 1]} : vector<8x96xf32> to vector<8x16xf32>
    %147 = arith.truncf %146 : vector<8x16xf32> to vector<8x16xbf16>
    %148 = vector.extract_strided_slice %73 {offsets = [0, 48], sizes = [8, 16], strides = [1, 1]} : vector<8x96xf32> to vector<8x16xf32>
    %149 = arith.truncf %148 : vector<8x16xf32> to vector<8x16xbf16>
    %150 = vector.extract_strided_slice %73 {offsets = [0, 80], sizes = [8, 16], strides = [1, 1]} : vector<8x96xf32> to vector<8x16xf32>
    %151 = arith.truncf %150 : vector<8x16xf32> to vector<8x16xbf16>
    %152 = tpu.concatenate %88, %149 in 0 : vector<128x16xbf16>, vector<8x16xbf16> -> vector<136x16xbf16>
    %cst_54 = arith.constant dense<0.000000e+00> : vector<8x136xf32>
    %153 = tpu.matmul %147, %152, %cst_54 {dimension_numbers = #tpu.dot_dimension_numbers<[1], [1], [0], [0], [0, 0, 1, 0], [], []>} : vector<8x16xbf16>, vector<136x16xbf16>, vector<8x136xf32> -> vector<8x136xf32>
    %154 = vector.extract_strided_slice %153 {offsets = [0, 128], sizes = [8, 8], strides = [1, 1]} : vector<8x136xf32> to vector<8x8xf32>
    %155 = arith.addf %154, %84 : vector<8x8xf32>
    %156 = vector.extract_strided_slice %153 {offsets = [0, 0], sizes = [8, 15], strides = [1, 1]} : vector<8x136xf32> to vector<8x15xf32>
    %c0_i32_55 = arith.constant 0 : i32
    %157 = vector.broadcast %c0_i32_55 : i32 to vector<8x1xi32>
    %158 = arith.shrsi %87, %157 : vector<8x1xi32>
    %c1_i32_56 = arith.constant 1 : i32
    %159 = vector.broadcast %c1_i32_56 : i32 to vector<8x1xi32>
    %160 = arith.andi %158, %159 : vector<8x1xi32>
    %c1_i32_57 = arith.constant 1 : i32
    %161 = vector.broadcast %c1_i32_57 : i32 to vector<8x1xi32>
    %162 = arith.cmpi eq, %160, %161 : vector<8x1xi32>
    %163 = vector.extract_strided_slice %156 {offsets = [0, 1], sizes = [8, 14], strides = [1, 1]} : vector<8x15xf32> to vector<8x14xf32>
    %164 = vector.extract_strided_slice %156 {offsets = [0, 0], sizes = [8, 14], strides = [1, 1]} : vector<8x15xf32> to vector<8x14xf32>
    %165 = vector.shape_cast %162 : vector<8x1xi1> to vector<8x1xi1>
    %166 = vector.broadcast %165 : vector<8x1xi1> to vector<8x14xi1>
    %167 = arith.select %166, %163, %164 : vector<8x14xi1>, vector<8x14xf32>
    %c1_i32_58 = arith.constant 1 : i32
    %168 = vector.broadcast %c1_i32_58 : i32 to vector<8x1xi32>
    %169 = arith.shrsi %87, %168 : vector<8x1xi32>
    %c1_i32_59 = arith.constant 1 : i32
    %170 = vector.broadcast %c1_i32_59 : i32 to vector<8x1xi32>
    %171 = arith.andi %169, %170 : vector<8x1xi32>
    %c1_i32_60 = arith.constant 1 : i32
    %172 = vector.broadcast %c1_i32_60 : i32 to vector<8x1xi32>
    %173 = arith.cmpi eq, %171, %172 : vector<8x1xi32>
    %174 = vector.extract_strided_slice %167 {offsets = [0, 2], sizes = [8, 12], strides = [1, 1]} : vector<8x14xf32> to vector<8x12xf32>
    %175 = vector.extract_strided_slice %167 {offsets = [0, 0], sizes = [8, 12], strides = [1, 1]} : vector<8x14xf32> to vector<8x12xf32>
    %176 = vector.shape_cast %173 : vector<8x1xi1> to vector<8x1xi1>
    %177 = vector.broadcast %176 : vector<8x1xi1> to vector<8x12xi1>
    %178 = arith.select %177, %174, %175 : vector<8x12xi1>, vector<8x12xf32>
    %c2_i32_61 = arith.constant 2 : i32
    %179 = vector.broadcast %c2_i32_61 : i32 to vector<8x1xi32>
    %180 = arith.shrsi %87, %179 : vector<8x1xi32>
    %c1_i32_62 = arith.constant 1 : i32
    %181 = vector.broadcast %c1_i32_62 : i32 to vector<8x1xi32>
    %182 = arith.andi %180, %181 : vector<8x1xi32>
    %c1_i32_63 = arith.constant 1 : i32
    %183 = vector.broadcast %c1_i32_63 : i32 to vector<8x1xi32>
    %184 = arith.cmpi eq, %182, %183 : vector<8x1xi32>
    %185 = vector.extract_strided_slice %178 {offsets = [0, 4], sizes = [8, 8], strides = [1, 1]} : vector<8x12xf32> to vector<8x8xf32>
    %186 = vector.extract_strided_slice %178 {offsets = [0, 0], sizes = [8, 8], strides = [1, 1]} : vector<8x12xf32> to vector<8x8xf32>
    %187 = vector.shape_cast %184 : vector<8x1xi1> to vector<8x1xi1>
    %188 = vector.broadcast %187 : vector<8x1xi1> to vector<8x8xi1>
    %189 = arith.select %188, %185, %186 : vector<8x8xi1>, vector<8x8xf32>
    %190 = arith.addf %155, %189 : vector<8x8xf32>
    %cst_64 = arith.constant dense<0xFF800000> : vector<8xf32>
    %191 = vector.multi_reduction <maximumf>, %190, %cst_64 [1] : vector<8x8xf32> to vector<8xf32>
    %192 = vector.shape_cast %191 : vector<8xf32> to vector<8x1xf32>
    %193 = vector.broadcast %192 : vector<8x1xf32> to vector<8x8xf32>
    %194 = arith.subf %190, %193 : vector<8x8xf32>
    %195 = math.exp %194 : vector<8x8xf32>
    %cst_65 = arith.constant dense<0.000000e+00> : vector<8xf32>
    %196 = vector.multi_reduction <add>, %195, %cst_65 [1] : vector<8x8xf32> to vector<8xf32>
    %197 = vector.shape_cast %196 : vector<8xf32> to vector<8x1xf32>
    %198 = tpu.reciprocal %197 {approx = true} : vector<8x1xf32> -> vector<8x1xf32>
    %199 = vector.broadcast %198 : vector<8x1xf32> to vector<8x8xf32>
    %200 = arith.mulf %195, %199 : vector<8x8xf32>
    %201 = arith.truncf %200 : vector<8x8xf32> to vector<8x8xbf16>
    %cst_66 = arith.constant dense<0.000000e+00> : vector<8x16xf32>
    %202 = tpu.matmul %201, %151, %cst_66 {dimension_numbers = #tpu.dot_dimension_numbers<[1], [0], [0], [1], [0, 0, 1, 1], [], []>} : vector<8x8xbf16>, vector<8x16xbf16>, vector<8x16xf32> -> vector<8x16xf32>
    %203 = tpu.concatenate %145, %202 in 1 : vector<8x16xf32>, vector<8x16xf32> -> vector<8x32xf32>
    %204 = arith.truncf %203 : vector<8x32xf32> to vector<8x32xbf16>
    %c0_67 = arith.constant 0 : index
    %c0_68 = arith.constant 0 : index
    %205 = vector.load %arg13[%c0_67, %c0_68] : memref<32x32xbf16, #tpu.memory_space<vmem>>, vector<32x32xbf16>
    %cst_69 = arith.constant dense<0.000000e+00> : vector<8x32xf32>
    %206 = tpu.matmul %204, %205, %cst_69 {dimension_numbers = #tpu.dot_dimension_numbers<[1], [0], [0], [1], [0, 0, 1, 1], [], []>} : vector<8x32xbf16>, vector<32x32xbf16>, vector<8x32xf32> -> vector<8x32xf32>
    %207 = arith.addf %46, %206 : vector<8x32xf32>
    %c0_70 = arith.constant 0 : index
    %c0_71 = arith.constant 0 : index
    %208 = vector.load %arg14[%c0_70, %c0_71] : memref<1x32xf32, #tpu.memory_space<vmem>>, vector<1x32xf32>
    %209 = vector.broadcast %208 : vector<1x32xf32> to vector<8x32xf32>
    %210 = arith.addf %207, %209 : vector<8x32xf32>
    %c0_72 = arith.constant 0 : index
    %c0_73 = arith.constant 0 : index
    %211 = vector.load %arg16[%c0_72, %c0_73] : memref<1x32xf32, #tpu.memory_space<vmem>>, vector<1x32xf32>
    %c0_74 = arith.constant 0 : index
    %c0_75 = arith.constant 0 : index
    %212 = vector.load %arg17[%c0_74, %c0_75] : memref<1x32xf32, #tpu.memory_space<vmem>>, vector<1x32xf32>
    %cst_76 = arith.constant dense<0.000000e+00> : vector<8xf32>
    %213 = vector.multi_reduction <add>, %210, %cst_76 [1] : vector<8x32xf32> to vector<8xf32>
    %214 = vector.shape_cast %213 : vector<8xf32> to vector<8x1xf32>
    %cst_77 = arith.constant 3.200000e+01 : f32
    %215 = vector.broadcast %cst_77 : f32 to vector<8x1xf32>
    %216 = arith.divf %214, %215 : vector<8x1xf32>
    %217 = vector.broadcast %216 : vector<8x1xf32> to vector<8x32xf32>
    %218 = arith.subf %210, %217 : vector<8x32xf32>
    %219 = arith.mulf %218, %218 : vector<8x32xf32>
    %cst_78 = arith.constant dense<0.000000e+00> : vector<8xf32>
    %220 = vector.multi_reduction <add>, %219, %cst_78 [1] : vector<8x32xf32> to vector<8xf32>
    %221 = vector.shape_cast %220 : vector<8xf32> to vector<8x1xf32>
    %cst_79 = arith.constant 3.200000e+01 : f32
    %222 = vector.broadcast %cst_79 : f32 to vector<8x1xf32>
    %223 = arith.divf %221, %222 : vector<8x1xf32>
    %224 = vector.broadcast %216 : vector<8x1xf32> to vector<8x32xf32>
    %225 = arith.subf %210, %224 : vector<8x32xf32>
    %cst_80 = arith.constant 9.99999974E-6 : f32
    %226 = vector.broadcast %cst_80 : f32 to vector<8x1xf32>
    %227 = arith.addf %223, %226 : vector<8x1xf32>
    %228 = math.rsqrt %227 : vector<8x1xf32>
    %229 = vector.broadcast %228 : vector<8x1xf32> to vector<8x32xf32>
    %230 = arith.mulf %225, %229 : vector<8x32xf32>
    %231 = vector.broadcast %211 : vector<1x32xf32> to vector<8x32xf32>
    %232 = arith.mulf %230, %231 : vector<8x32xf32>
    %233 = vector.broadcast %212 : vector<1x32xf32> to vector<8x32xf32>
    %234 = arith.addf %232, %233 : vector<8x32xf32>
    %235 = arith.truncf %234 : vector<8x32xf32> to vector<8x32xbf16>
    %c0_81 = arith.constant 0 : index
    %c0_82 = arith.constant 0 : index
    %236 = vector.load %arg18[%c0_81, %c0_82] : memref<32x128xbf16, #tpu.memory_space<vmem>>, vector<32x128xbf16>
    %cst_83 = arith.constant dense<0.000000e+00> : vector<8x128xf32>
    %237 = tpu.matmul %235, %236, %cst_83 {dimension_numbers = #tpu.dot_dimension_numbers<[1], [0], [0], [1], [0, 0, 1, 1], [], []>} : vector<8x32xbf16>, vector<32x128xbf16>, vector<8x128xf32> -> vector<8x128xf32>
    %c0_84 = arith.constant 0 : index
    %c0_85 = arith.constant 0 : index
    %238 = vector.load %arg19[%c0_84, %c0_85] : memref<1x128xf32, #tpu.memory_space<vmem>>, vector<1x128xf32>
    %239 = vector.broadcast %238 : vector<1x128xf32> to vector<8x128xf32>
    %240 = arith.addf %237, %239 : vector<8x128xf32>
    %241 = vector.extract_strided_slice %240 {offsets = [0, 0], sizes = [8, 64], strides = [1, 1]} : vector<8x128xf32> to vector<8x64xf32>
    %242 = vector.extract_strided_slice %240 {offsets = [0, 64], sizes = [8, 64], strides = [1, 1]} : vector<8x128xf32> to vector<8x64xf32>
    %243 = arith.negf %242 : vector<8x64xf32>
    %244 = math.exp %243 : vector<8x64xf32>
    %cst_86 = arith.constant 1.000000e+00 : f32
    %245 = vector.broadcast %cst_86 : f32 to vector<8x64xf32>
    %246 = arith.addf %245, %244 : vector<8x64xf32>
    %247 = arith.divf %245, %246 : vector<8x64xf32>
    %248 = arith.mulf %241, %247 : vector<8x64xf32>
    %c0_87 = arith.constant 0 : index
    %c0_88 = arith.constant 0 : index
    %249 = vector.load %arg20[%c0_87, %c0_88] : memref<3x64xf32, #tpu.memory_space<vmem>>, vector<3x64xf32>
    %cst_89 = arith.constant 0.000000e+00 : f32
    %250 = vector.broadcast %cst_89 : f32 to vector<8x64xf32>
    %cst_90 = arith.constant 0.000000e+00 : f32
    %251 = vector.broadcast %cst_90 : f32 to vector<1x64xf32>
    %252 = vector.extract_strided_slice %248 {offsets = [0, 0], sizes = [7, 64], strides = [1, 1]} : vector<8x64xf32> to vector<7x64xf32>
    %253 = tpu.concatenate %251, %252 in 0 : vector<1x64xf32>, vector<7x64xf32> -> vector<8x64xf32>
    %254 = vector.extract_strided_slice %249 {offsets = [0, 0], sizes = [1, 64], strides = [1, 1]} : vector<3x64xf32> to vector<1x64xf32>
    %255 = vector.broadcast %254 : vector<1x64xf32> to vector<8x64xf32>
    %256 = arith.mulf %253, %255 : vector<8x64xf32>
    %257 = arith.addf %250, %256 : vector<8x64xf32>
    %258 = vector.extract_strided_slice %249 {offsets = [1, 0], sizes = [1, 64], strides = [1, 1]} : vector<3x64xf32> to vector<1x64xf32>
    %259 = vector.broadcast %258 : vector<1x64xf32> to vector<8x64xf32>
    %260 = arith.mulf %248, %259 : vector<8x64xf32>
    %261 = arith.addf %257, %260 : vector<8x64xf32>
    %262 = vector.extract_strided_slice %248 {offsets = [1, 0], sizes = [7, 64], strides = [1, 1]} : vector<8x64xf32> to vector<7x64xf32>
    %cst_91 = arith.constant 0.000000e+00 : f32
    %263 = vector.broadcast %cst_91 : f32 to vector<1x64xf32>
    %264 = tpu.concatenate %262, %263 in 0 : vector<7x64xf32>, vector<1x64xf32> -> vector<8x64xf32>
    %265 = vector.extract_strided_slice %249 {offsets = [2, 0], sizes = [1, 64], strides = [1, 1]} : vector<3x64xf32> to vector<1x64xf32>
    %266 = vector.broadcast %265 : vector<1x64xf32> to vector<8x64xf32>
    %267 = arith.mulf %264, %266 : vector<8x64xf32>
    %268 = arith.addf %261, %267 : vector<8x64xf32>
    %c0_92 = arith.constant 0 : index
    %c0_93 = arith.constant 0 : index
    %269 = vector.load %arg21[%c0_92, %c0_93] : memref<1x64xf32, #tpu.memory_space<vmem>>, vector<1x64xf32>
    %270 = vector.broadcast %269 : vector<1x64xf32> to vector<8x64xf32>
    %271 = arith.mulf %268, %270 : vector<8x64xf32>
    %c0_94 = arith.constant 0 : index
    %c0_95 = arith.constant 0 : index
    %272 = vector.load %arg22[%c0_94, %c0_95] : memref<1x64xf32, #tpu.memory_space<vmem>>, vector<1x64xf32>
    %273 = vector.broadcast %272 : vector<1x64xf32> to vector<8x64xf32>
    %274 = arith.addf %271, %273 : vector<8x64xf32>
    %275 = arith.negf %274 : vector<8x64xf32>
    %276 = math.exp %275 : vector<8x64xf32>
    %cst_96 = arith.constant 1.000000e+00 : f32
    %277 = vector.broadcast %cst_96 : f32 to vector<8x64xf32>
    %278 = arith.addf %277, %276 : vector<8x64xf32>
    %279 = arith.divf %277, %278 : vector<8x64xf32>
    %280 = arith.mulf %274, %279 : vector<8x64xf32>
    %281 = arith.truncf %280 : vector<8x64xf32> to vector<8x64xbf16>
    %c0_97 = arith.constant 0 : index
    %c0_98 = arith.constant 0 : index
    %282 = vector.load %arg23[%c0_97, %c0_98] : memref<64x32xbf16, #tpu.memory_space<vmem>>, vector<64x32xbf16>
    %cst_99 = arith.constant dense<0.000000e+00> : vector<8x32xf32>
    %283 = tpu.matmul %281, %282, %cst_99 {dimension_numbers = #tpu.dot_dimension_numbers<[1], [0], [0], [1], [0, 0, 1, 1], [], []>} : vector<8x64xbf16>, vector<64x32xbf16>, vector<8x32xf32> -> vector<8x32xf32>
    %284 = arith.addf %210, %283 : vector<8x32xf32>
    %c0_100 = arith.constant 0 : index
    %c0_101 = arith.constant 0 : index
    %285 = vector.load %arg24[%c0_100, %c0_101] : memref<1x32xf32, #tpu.memory_space<vmem>>, vector<1x32xf32>
    %286 = vector.broadcast %285 : vector<1x32xf32> to vector<8x32xf32>
    %287 = arith.addf %284, %286 : vector<8x32xf32>
    %c0_102 = arith.constant 0 : index
    %c0_103 = arith.constant 0 : index
    %288 = vector.load %arg25[%c0_102, %c0_103] : memref<1x32xf32, #tpu.memory_space<vmem>>, vector<1x32xf32>
    %c0_104 = arith.constant 0 : index
    %c0_105 = arith.constant 0 : index
    %289 = vector.load %arg26[%c0_104, %c0_105] : memref<1x32xf32, #tpu.memory_space<vmem>>, vector<1x32xf32>
    %c0_106 = arith.constant 0 : index
    %c0_107 = arith.constant 0 : index
    %290 = vector.load %arg27[%c0_106, %c0_107] : memref<32x64xbf16, #tpu.memory_space<vmem>>, vector<32x64xbf16>
    %c0_108 = arith.constant 0 : index
    %c0_109 = arith.constant 0 : index
    %291 = vector.load %arg28[%c0_108, %c0_109] : memref<1x64xf32, #tpu.memory_space<vmem>>, vector<1x64xf32>
    %c0_110 = arith.constant 0 : index
    %c0_111 = arith.constant 0 : index
    %292 = vector.load %arg29[%c0_110, %c0_111] : memref<64x32xbf16, #tpu.memory_space<vmem>>, vector<64x32xbf16>
    %c0_112 = arith.constant 0 : index
    %c0_113 = arith.constant 0 : index
    %293 = vector.load %arg30[%c0_112, %c0_113] : memref<1x32xf32, #tpu.memory_space<vmem>>, vector<1x32xf32>
    %cst_114 = arith.constant dense<0.000000e+00> : vector<8xf32>
    %294 = vector.multi_reduction <add>, %287, %cst_114 [1] : vector<8x32xf32> to vector<8xf32>
    %295 = vector.shape_cast %294 : vector<8xf32> to vector<8x1xf32>
    %cst_115 = arith.constant 3.200000e+01 : f32
    %296 = vector.broadcast %cst_115 : f32 to vector<8x1xf32>
    %297 = arith.divf %295, %296 : vector<8x1xf32>
    %298 = vector.broadcast %297 : vector<8x1xf32> to vector<8x32xf32>
    %299 = arith.subf %287, %298 : vector<8x32xf32>
    %300 = arith.mulf %299, %299 : vector<8x32xf32>
    %cst_116 = arith.constant dense<0.000000e+00> : vector<8xf32>
    %301 = vector.multi_reduction <add>, %300, %cst_116 [1] : vector<8x32xf32> to vector<8xf32>
    %302 = vector.shape_cast %301 : vector<8xf32> to vector<8x1xf32>
    %cst_117 = arith.constant 3.200000e+01 : f32
    %303 = vector.broadcast %cst_117 : f32 to vector<8x1xf32>
    %304 = arith.divf %302, %303 : vector<8x1xf32>
    %305 = vector.broadcast %297 : vector<8x1xf32> to vector<8x32xf32>
    %306 = arith.subf %287, %305 : vector<8x32xf32>
    %cst_118 = arith.constant 9.99999974E-6 : f32
    %307 = vector.broadcast %cst_118 : f32 to vector<8x1xf32>
    %308 = arith.addf %304, %307 : vector<8x1xf32>
    %309 = math.rsqrt %308 : vector<8x1xf32>
    %310 = vector.broadcast %309 : vector<8x1xf32> to vector<8x32xf32>
    %311 = arith.mulf %306, %310 : vector<8x32xf32>
    %312 = vector.broadcast %288 : vector<1x32xf32> to vector<8x32xf32>
    %313 = arith.mulf %311, %312 : vector<8x32xf32>
    %314 = vector.broadcast %289 : vector<1x32xf32> to vector<8x32xf32>
    %315 = arith.addf %313, %314 : vector<8x32xf32>
    %316 = arith.truncf %315 : vector<8x32xf32> to vector<8x32xbf16>
    %cst_119 = arith.constant dense<0.000000e+00> : vector<8x64xf32>
    %317 = tpu.matmul %316, %290, %cst_119 {dimension_numbers = #tpu.dot_dimension_numbers<[1], [0], [0], [1], [0, 0, 1, 1], [], []>} : vector<8x32xbf16>, vector<32x64xbf16>, vector<8x64xf32> -> vector<8x64xf32>
    %318 = vector.broadcast %291 : vector<1x64xf32> to vector<8x64xf32>
    %319 = arith.addf %317, %318 : vector<8x64xf32>
    %320 = arith.negf %319 : vector<8x64xf32>
    %321 = math.exp %320 : vector<8x64xf32>
    %cst_120 = arith.constant 1.000000e+00 : f32
    %322 = vector.broadcast %cst_120 : f32 to vector<8x64xf32>
    %323 = arith.addf %322, %321 : vector<8x64xf32>
    %324 = arith.divf %322, %323 : vector<8x64xf32>
    %325 = arith.mulf %319, %324 : vector<8x64xf32>
    %326 = arith.truncf %325 : vector<8x64xf32> to vector<8x64xbf16>
    %cst_121 = arith.constant dense<0.000000e+00> : vector<8x32xf32>
    %327 = tpu.matmul %326, %292, %cst_121 {dimension_numbers = #tpu.dot_dimension_numbers<[1], [0], [0], [1], [0, 0, 1, 1], [], []>} : vector<8x64xbf16>, vector<64x32xbf16>, vector<8x32xf32> -> vector<8x32xf32>
    %328 = vector.broadcast %293 : vector<1x32xf32> to vector<8x32xf32>
    %329 = arith.addf %327, %328 : vector<8x32xf32>
    %cst_122 = arith.constant 5.000000e-01 : f32
    %330 = vector.broadcast %cst_122 : f32 to vector<8x32xf32>
    %331 = arith.mulf %330, %329 : vector<8x32xf32>
    %332 = arith.addf %287, %331 : vector<8x32xf32>
    %c0_123 = arith.constant 0 : index
    %c0_124 = arith.constant 0 : index
    %333 = vector.load %arg31[%c0_123, %c0_124] : memref<1x32xf32, #tpu.memory_space<vmem>>, vector<1x32xf32>
    %c0_125 = arith.constant 0 : index
    %c0_126 = arith.constant 0 : index
    %334 = vector.load %arg32[%c0_125, %c0_126] : memref<1x32xf32, #tpu.memory_space<vmem>>, vector<1x32xf32>
    %cst_127 = arith.constant dense<0.000000e+00> : vector<8xf32>
    %335 = vector.multi_reduction <add>, %332, %cst_127 [1] : vector<8x32xf32> to vector<8xf32>
    %336 = vector.shape_cast %335 : vector<8xf32> to vector<8x1xf32>
    %cst_128 = arith.constant 3.200000e+01 : f32
    %337 = vector.broadcast %cst_128 : f32 to vector<8x1xf32>
    %338 = arith.divf %336, %337 : vector<8x1xf32>
    %339 = vector.broadcast %338 : vector<8x1xf32> to vector<8x32xf32>
    %340 = arith.subf %332, %339 : vector<8x32xf32>
    %341 = arith.mulf %340, %340 : vector<8x32xf32>
    %cst_129 = arith.constant dense<0.000000e+00> : vector<8xf32>
    %342 = vector.multi_reduction <add>, %341, %cst_129 [1] : vector<8x32xf32> to vector<8xf32>
    %343 = vector.shape_cast %342 : vector<8xf32> to vector<8x1xf32>
    %cst_130 = arith.constant 3.200000e+01 : f32
    %344 = vector.broadcast %cst_130 : f32 to vector<8x1xf32>
    %345 = arith.divf %343, %344 : vector<8x1xf32>
    %346 = vector.broadcast %338 : vector<8x1xf32> to vector<8x32xf32>
    %347 = arith.subf %332, %346 : vector<8x32xf32>
    %cst_131 = arith.constant 9.99999974E-6 : f32
    %348 = vector.broadcast %cst_131 : f32 to vector<8x1xf32>
    %349 = arith.addf %345, %348 : vector<8x1xf32>
    %350 = math.rsqrt %349 : vector<8x1xf32>
    %351 = vector.broadcast %350 : vector<8x1xf32> to vector<8x32xf32>
    %352 = arith.mulf %347, %351 : vector<8x32xf32>
    %353 = vector.broadcast %333 : vector<1x32xf32> to vector<8x32xf32>
    %354 = arith.mulf %352, %353 : vector<8x32xf32>
    %355 = vector.broadcast %334 : vector<1x32xf32> to vector<8x32xf32>
    %356 = arith.addf %354, %355 : vector<8x32xf32>
    %c0_132 = arith.constant 0 : index
    %c0_133 = arith.constant 0 : index
    %c0_134 = arith.constant 0 : index
    %357 = vector.load %arg33[%c0_132, %c0_133, %c0_134] : memref<1x8x32xf32, #tpu.memory_space<vmem>>, vector<1x8x32xf32>
    %358 = vector.shape_cast %357 : vector<1x8x32xf32> to vector<8x32xf32>
    %359 = vector.shape_cast %356 : vector<8x32xf32> to vector<1x8x32xf32>
    tpu.vector_store %arg33[%c0_132, %c0_133, %c0_134], %359 {strides = array<i32>} : memref<1x8x32xf32, #tpu.memory_space<vmem>>, vector<1x8x32xf32>,
    return
  }
  func.func @transform_0(%arg0: i32) -> (i32, i32, i32) {
    %c0_i32 = arith.constant 0 : i32
    %c0_i32_0 = arith.constant 0 : i32
    %c0_i32_1 = arith.constant 0 : i32
    return %arg0, %c0_i32, %c0_i32_0 : i32, i32, i32
  }
  func.func @transform_1(%arg0: i32) -> (i32, i32, i32) {
    %c0_i32 = arith.constant 0 : i32
    %c0_i32_0 = arith.constant 0 : i32
    %c0_i32_1 = arith.constant 0 : i32
    return %arg0, %c0_i32, %c0_i32_0 : i32, i32, i32
  }
  func.func @transform_2(%arg0: i32) -> (i32, i32, i32) {
    %c0_i32 = arith.constant 0 : i32
    %c0_i32_0 = arith.constant 0 : i32
    %c0_i32_1 = arith.constant 0 : i32
    return %arg0, %c0_i32, %c0_i32_0 : i32, i32, i32
  }
  func.func @transform_3(%arg0: i32) -> (i32, i32) {
    %c0_i32 = arith.constant 0 : i32
    %c0_i32_0 = arith.constant 0 : i32
    %c0_i32_1 = arith.constant 0 : i32
    return %c0_i32, %c0_i32_0 : i32, i32
  }
  func.func @transform_4(%arg0: i32) -> (i32, i32) {
    %c0_i32 = arith.constant 0 : i32
    %c0_i32_0 = arith.constant 0 : i32
    %c0_i32_1 = arith.constant 0 : i32
    return %c0_i32, %c0_i32_0 : i32, i32
  }
  func.func @transform_5(%arg0: i32) -> (i32, i32) {
    %c0_i32 = arith.constant 0 : i32
    %c0_i32_0 = arith.constant 0 : i32
    %c0_i32_1 = arith.constant 0 : i32
    return %c0_i32, %c0_i32_0 : i32, i32
  }
  func.func @transform_6(%arg0: i32) -> (i32, i32) {
    %c0_i32 = arith.constant 0 : i32
    %c0_i32_0 = arith.constant 0 : i32
    %c0_i32_1 = arith.constant 0 : i32
    return %c0_i32, %c0_i32_0 : i32, i32
  }
  func.func @transform_7(%arg0: i32) -> (i32, i32) {
    %c0_i32 = arith.constant 0 : i32
    %c0_i32_0 = arith.constant 0 : i32
    %c0_i32_1 = arith.constant 0 : i32
    return %c0_i32, %c0_i32_0 : i32, i32
  }
  func.func @transform_8(%arg0: i32) -> (i32, i32) {
    %c0_i32 = arith.constant 0 : i32
    %c0_i32_0 = arith.constant 0 : i32
    %c0_i32_1 = arith.constant 0 : i32
    return %c0_i32, %c0_i32_0 : i32, i32
  }
  func.func @transform_9(%arg0: i32) -> (i32, i32) {
    %c0_i32 = arith.constant 0 : i32
    %c0_i32_0 = arith.constant 0 : i32
    %c0_i32_1 = arith.constant 0 : i32
    return %c0_i32, %c0_i32_0 : i32, i32
  }
  func.func @transform_10(%arg0: i32) -> (i32, i32) {
    %c0_i32 = arith.constant 0 : i32
    %c0_i32_0 = arith.constant 0 : i32
    %c0_i32_1 = arith.constant 0 : i32
    return %c0_i32, %c0_i32_0 : i32, i32
  }
  func.func @transform_11(%arg0: i32) -> (i32, i32) {
    %c0_i32 = arith.constant 0 : i32
    %c0_i32_0 = arith.constant 0 : i32
    %c0_i32_1 = arith.constant 0 : i32
    return %c0_i32, %c0_i32_0 : i32, i32
  }
  func.func @transform_12(%arg0: i32) -> (i32, i32) {
    %c0_i32 = arith.constant 0 : i32
    %c0_i32_0 = arith.constant 0 : i32
    %c0_i32_1 = arith.constant 0 : i32
    return %c0_i32, %c0_i32_0 : i32, i32
  }
  func.func @transform_13(%arg0: i32) -> (i32, i32) {
    %c0_i32 = arith.constant 0 : i32
    %c0_i32_0 = arith.constant 0 : i32
    %c0_i32_1 = arith.constant 0 : i32
    return %c0_i32, %c0_i32_0 : i32, i32
  }
  func.func @transform_14(%arg0: i32) -> (i32, i32) {
    %c0_i32 = arith.constant 0 : i32
    %c0_i32_0 = arith.constant 0 : i32
    %c0_i32_1 = arith.constant 0 : i32
    return %c0_i32, %c0_i32_0 : i32, i32
  }
  func.func @transform_15(%arg0: i32) -> (i32, i32) {
    %c0_i32 = arith.constant 0 : i32
    %c0_i32_0 = arith.constant 0 : i32
    %c0_i32_1 = arith.constant 0 : i32
    return %c0_i32, %c0_i32_0 : i32, i32
  }
  func.func @transform_16(%arg0: i32) -> (i32, i32) {
    %c0_i32 = arith.constant 0 : i32
    %c0_i32_0 = arith.constant 0 : i32
    %c0_i32_1 = arith.constant 0 : i32
    return %c0_i32, %c0_i32_0 : i32, i32
  }
  func.func @transform_17(%arg0: i32) -> (i32, i32) {
    %c0_i32 = arith.constant 0 : i32
    %c0_i32_0 = arith.constant 0 : i32
    %c0_i32_1 = arith.constant 0 : i32
    return %c0_i32, %c0_i32_0 : i32, i32
  }
  func.func @transform_18(%arg0: i32) -> (i32, i32) {
    %c0_i32 = arith.constant 0 : i32
    %c0_i32_0 = arith.constant 0 : i32
    %c0_i32_1 = arith.constant 0 : i32
    return %c0_i32, %c0_i32_0 : i32, i32
  }
  func.func @transform_19(%arg0: i32) -> (i32, i32) {
    %c0_i32 = arith.constant 0 : i32
    %c0_i32_0 = arith.constant 0 : i32
    %c0_i32_1 = arith.constant 0 : i32
    return %c0_i32, %c0_i32_0 : i32, i32
  }
  func.func @transform_20(%arg0: i32) -> (i32, i32) {
    %c0_i32 = arith.constant 0 : i32
    %c0_i32_0 = arith.constant 0 : i32
    %c0_i32_1 = arith.constant 0 : i32
    return %c0_i32, %c0_i32_0 : i32, i32
  }
  func.func @transform_21(%arg0: i32) -> (i32, i32) {
    %c0_i32 = arith.constant 0 : i32
    %c0_i32_0 = arith.constant 0 : i32
    %c0_i32_1 = arith.constant 0 : i32
    return %c0_i32, %c0_i32_0 : i32, i32
  }
  func.func @transform_22(%arg0: i32) -> (i32, i32) {
    %c0_i32 = arith.constant 0 : i32
    %c0_i32_0 = arith.constant 0 : i32
    %c0_i32_1 = arith.constant 0 : i32
    return %c0_i32, %c0_i32_0 : i32, i32
  }
  func.func @transform_23(%arg0: i32) -> (i32, i32) {
    %c0_i32 = arith.constant 0 : i32
    %c0_i32_0 = arith.constant 0 : i32
    %c0_i32_1 = arith.constant 0 : i32
    return %c0_i32, %c0_i32_0 : i32, i32
  }
  func.func @transform_24(%arg0: i32) -> (i32, i32) {
    %c0_i32 = arith.constant 0 : i32
    %c0_i32_0 = arith.constant 0 : i32
    %c0_i32_1 = arith.constant 0 : i32
    return %c0_i32, %c0_i32_0 : i32, i32
  }
  func.func @transform_25(%arg0: i32) -> (i32, i32) {
    %c0_i32 = arith.constant 0 : i32
    %c0_i32_0 = arith.constant 0 : i32
    %c0_i32_1 = arith.constant 0 : i32
    return %c0_i32, %c0_i32_0 : i32, i32
  }
  func.func @transform_26(%arg0: i32) -> (i32, i32) {
    %c0_i32 = arith.constant 0 : i32
    %c0_i32_0 = arith.constant 0 : i32
    %c0_i32_1 = arith.constant 0 : i32
    return %c0_i32, %c0_i32_0 : i32, i32
  }
  func.func @transform_27(%arg0: i32) -> (i32, i32) {
    %c0_i32 = arith.constant 0 : i32
    %c0_i32_0 = arith.constant 0 : i32
    %c0_i32_1 = arith.constant 0 : i32
    return %c0_i32, %c0_i32_0 : i32, i32
  }
  func.func @transform_28(%arg0: i32) -> (i32, i32) {
    %c0_i32 = arith.constant 0 : i32
    %c0_i32_0 = arith.constant 0 : i32
    %c0_i32_1 = arith.constant 0 : i32
    return %c0_i32, %c0_i32_0 : i32, i32
  }
  func.func @transform_29(%arg0: i32) -> (i32, i32) {
    %c0_i32 = arith.constant 0 : i32
    %c0_i32_0 = arith.constant 0 : i32
    %c0_i32_1 = arith.constant 0 : i32
    return %c0_i32, %c0_i32_0 : i32, i32
  }
  func.func @transform_30(%arg0: i32) -> (i32, i32) {
    %c0_i32 = arith.constant 0 : i32
    %c0_i32_0 = arith.constant 0 : i32
    %c0_i32_1 = arith.constant 0 : i32
    return %c0_i32, %c0_i32_0 : i32, i32
  }
  func.func @transform_31(%arg0: i32) -> (i32, i32) {
    %c0_i32 = arith.constant 0 : i32
    %c0_i32_0 = arith.constant 0 : i32
    %c0_i32_1 = arith.constant 0 : i32
    return %c0_i32, %c0_i32_0 : i32, i32
  }
  func.func @transform_32(%arg0: i32) -> (i32, i32, i32) {
    %c0_i32 = arith.constant 0 : i32
    %c0_i32_0 = arith.constant 0 : i32
    %c0_i32_1 = arith.constant 0 : i32
    return %arg0, %c0_i32, %c0_i32_0 : i32, i32, i32
  }
}

</mosaic_0001>

<bundles_post_ra>
// kernel: conformer_decoder_forward.5
= control target key start
LH: loop header
LB: loop body
LE: loop exit
PB: predicated region body
PF: predicated region fallthrough
CT: control target
= control target key end

     0   :  { %v155_v1 = vmov 0.0   ;;  %vm156_vm0 = vmmov 0   ;;  %s195_s0 = inlined_call_operand.vmem [shape: bf16[16,32], index: 0, kind: input, shape index: {}]   ;;  %s196_s1 = inlined_call_operand.vmem [shape: bf16[32,128], index: 1, kind: input, shape index: {}]   ;;  %s197_s2 = inlined_call_operand.vmem [shape: f32[1,128], index: 2, kind: input, shape index: {}]   ;;  %s198_s3 = inlined_call_operand.hbm [shape: f32[16,128], index: 3, kind: output, shape index: {}]  }
   0x1   :  { %v130_v0 = vld [vmem:[%s196_s1 + $0x8] sm:$0xff]   ;;  %117 = vmatprep.subr.bf16.mxu0 %v155_v1  ;;  %v131_v2 = vld [vmem:[%s196_s1] sm:$0xff]   ;;  %121 = vmatprep.mubr.msk.bf16.mxu0 %vm156_vm0, %v155_v1 }
   0x2   :  { %118 = vmatpush3.bf16.msra.mxu0 %v130_v0 }
   0x3   :  { %119 = vmatprep.subr.bf16.mxu0 %v155_v1 }
   0x4   :  { %8 = vsyncpa [#allocation3], 0  ;;  %v132_v3 = vld [vmem:[%s195_s0] sm:$0xff]   ;;  %vm46_vm1 = vcmask 261120   ;;  %s157_s20 = smov [#allocation2]  }
   0x5   :  { %v109_v4 = vld [vmem:[%s197_s2] ss:$0 sm:$0xff]  ;;  %s98_s21 = sshll.u32 %s157_s20, 4  ;;  %s99_s21 = int_to_ptr.vmem [resolvable:$true] %s98_s21 }
   0x6   :  { %120 = vmatpush3.bf16.msra.mxu0 %v131_v2  ;;  %s133_s1 = scalar_lea.vmem %s99_s21, 256  ;;  %p138_p1 = scmp.lt.s32.totalorder %s99_s21, %s99_s21 }
   0x7   :  { %p134_p0 = scmp.ne.s32.totalorder %s99_s21, %s133_s1  ;;  %p139_p2 = scmp.lt.s32.totalorder %s133_s1, %s133_s1 }
   0x9   :  { %122 = vmatmul.mubr.msk.bf16.vlgmr.msra.gmra.mxu0 %vm46_vm1, %v132_v3  ;;  %p140_p3 = por %p139_p2, %p138_p1 }
   0xb   :  { %p141_p4 = pnand %p140_p3, %p134_p0 }
  0xc9   :  { %v84_v5 = vpop.f32.mrf.mxu0 }
  0xca   :  { %v85_v6 = vadd.f32 %v109_v4, %v84_v5 }
  0xcb   :  { %v123_v7 = vpop.f32.mrf.mxu0 }
  0xcc   :  { %91 = vst [vmem:[#allocation2] sm:$0xff] %v85_v6 }
  0xcd   :  { %v87_v8 = vpop.f32.mrf.mxu0 }
  0xce   :  { %v88_v9 = vadd.f32 %v109_v4, %v87_v8 }
  0xcf   :  { %v124_v10 = vpop.f32.mrf.mxu0 }
  0xd0   :  { %92 = vst [vmem:[#allocation2 + $0x8] sm:$0xff] %v88_v9 }
  0xd1   :  { %144 = shalt.err (!%p141_p4)
}
  0xd2   :  { %s158_s0 = smov 128   ;;  %s159_s2 = smov 8  }
  0xd3   :  { %104 = dma.vmem_to_hbm [thread:$0]  %s99_s21, 256, %s198_s3, [#allocation3], %s158_s0, %s158_s0, %s159_s2  }
  0xd4   :  { %153 = dma.done.wait [#allocation3], 256  }
  0xd5   :  { %154 = vsyncadd [#allocation3], 4294967040 }
  0xd6   :  { %108 = vsyncpa [#allocation3], 1 }

// kernel: conformer_decoder_forward.3
= control target key start
LH: loop header
LB: loop body
LE: loop exit
PB: predicated region body
PF: predicated region fallthrough
CT: control target
= control target key end

     0   :  { %s2641_s6 = smov 1   ;;  %s2642_s10 = smov 2   ;;  %s3132_s0 = inlined_call_operand.smem [shape: u32[33], index: -1, kind: input, shape index: {}] }
   0x1   :  { %s2694_s5 = sld [smem:[%s3132_s0]]   ;;  %s2643_s14 = smov 3  }
   0x2   :  { %s2699_s9 = sld [smem:[%s3132_s0 + %s2641_s6]]   ;;  %s2644_s18 = smov 4  }
   0x3   :  { %s2704_s13 = sld [smem:[%s3132_s0 + %s2642_s10]]   ;;  %s2645_s22 = smov 5  }
   0x4   :  { %s2709_s17 = sld [smem:[%s3132_s0 + %s2643_s14]]   ;;  %s2646_s26 = smov 6  }
   0x5   :  { %s2714_s21 = sld [smem:[%s3132_s0 + %s2644_s18]]   ;;  %s2647_s30 = smov 7  }
   0x6   :  { %s2719_s25 = sld [smem:[%s3132_s0 + %s2645_s22]]   ;;  %s2648_s4 = smov 8  }
   0x7   :  { %s2724_s29 = sld [smem:[%s3132_s0 + %s2646_s26]]   ;;  %s2649_s10 = smov 9  }
   0x8   :  { %s2729_s3 = sld [smem:[%s3132_s0 + %s2647_s30]]   ;;  %s2650_s15 = smov 10  }
   0x9   :  { %s2734_s8 = sld [smem:[%s3132_s0 + %s2648_s4]]   ;;  %s2651_s20 = smov 11  }
   0xa   :  { %s2739_s14 = sld [smem:[%s3132_s0 + %s2649_s10]]   ;;  %s2652_s26 = smov 12  }
   0xb   :  { %s2744_s19 = sld [smem:[%s3132_s0 + %s2650_s15]]   ;;  %s2653_s1 = smov 13  }
   0xc   :  { %s2749_s24 = sld [smem:[%s3132_s0 + %s2651_s20]]   ;;  %s2654_s7 = smov 14  }
   0xd   :  { %s2754_s30 = sld [smem:[%s3132_s0 + %s2652_s26]]   ;;  %s2655_s15 = smov 15  }
   0xe   :  { %s2759_s6 = sld [smem:[%s3132_s0 + %s2653_s1]]   ;;  %s2656_s22 = smov 16  }
   0xf   :  { %s2764_s12 = sld [smem:[%s3132_s0 + %s2654_s7]]   ;;  %s2657_s28 = smov 17  }
  0x10   :  { %s2769_s20 = sld [smem:[%s3132_s0 + %s2655_s15]]   ;;  %s2658_s7 = smov 18  }
  0x11   :  { %s2774_s27 = sld [smem:[%s3132_s0 + %s2656_s22]]   ;;  %s2659_s15 = smov 19  }
  0x12   :  { %s2779_s4 = sld [smem:[%s3132_s0 + %s2657_s28]]   ;;  %s2660_s22 = smov 20  }
  0x13   :  { %s2661_s28 = smov 21  }
  0x14   :  { %3137 = sst [smem:[#allocation2_spill]] %s2759_s6 }
  0x15   :  { %s2784_s6 = sld [smem:[%s3132_s0 + %s2658_s7]]   ;;  %s2662_s7 = smov 22  }
  0x16   :  { %3138 = sst [smem:[#allocation3_spill]] %s2769_s20 }
  0x17   :  { %3139 = sst [smem:[#allocation4_spill]] %s2774_s27 }
  0x18   :  { %3140 = sst [smem:[#allocation5_spill]] %s2779_s4 }
  0x19   :  { %s2789_s20 = sld [smem:[%s3132_s0 + %s2659_s15]]   ;;  %s2663_s15 = smov 23  }
  0x1a   :  { %s2794_s27 = sld [smem:[%s3132_s0 + %s2660_s22]]   ;;  %s2664_s22 = smov 24  }
  0x1b   :  { %3141 = sst [smem:[#allocation6_spill]] %s2784_s6 }
  0x1c   :  { %s2799_s4 = sld [smem:[%s3132_s0 + %s2661_s28]]   ;;  %s2665_s28 = smov 25  }
  0x1d   :  { %s2804_s6 = sld [smem:[%s3132_s0 + %s2662_s7]]   ;;  %s2666_s7 = smov 26  }
  0x1f   :  { %3142 = sst [smem:[#allocation7_spill]] %s2789_s20 }
  0x20   :  { %3143 = sst [smem:[#allocation8_spill]] %s2794_s27 }
  0x21   :  { %s2809_s20 = sld [smem:[%s3132_s0 + %s2663_s15]]   ;;  %s2667_s15 = smov 27  }
  0x22   :  { %3144 = sst [smem:[#allocation9_spill]] %s2799_s4 }
  0x23   :  { %3145 = sst [smem:[#allocation10_spill]] %s2804_s6 }
  0x24   :  { %s2814_s27 = sld [smem:[%s3132_s0 + %s2664_s22]]   ;;  %s2668_s22 = smov 28  }
  0x25   :  { %s2819_s4 = sld [smem:[%s3132_s0 + %s2665_s28]]   ;;  %s2669_s28 = smov 29  }
  0x26   :  { %s2824_s6 = sld [smem:[%s3132_s0 + %s2666_s7]]   ;;  %s2670_s7 = smov 30  }
  0x27   :  { %3146 = sst [smem:[#allocation11_spill]] %s2809_s20 }
  0x28   :  { %s2829_s20 = sld [smem:[%s3132_s0 + %s2667_s15]]   ;;  %s2671_s15 = smov 31  }
  0x2a   :  { %3147 = sst [smem:[#allocation12_spill]] %s2814_s27 }
  0x2b   :  { %3148 = sst [smem:[#allocation13_spill]] %s2819_s4 }
  0x2c   :  { %3149 = sst [smem:[#allocation14_spill]] %s2824_s6 }
  0x2d   :  { %s2834_s27 = sld [smem:[%s3132_s0 + %s2668_s22]]   ;;  %s2672_s22 = smov 32  }
  0x2e   :  { %3150 = sst [smem:[#allocation15_spill]] %s2829_s20 }
  0x2f   :  { %s2839_s4 = sld [smem:[%s3132_s0 + %s2669_s28]]   ;;  %s2856_s28 = smov 0  }
  0x30   :  { %s2844_s6 = sld [smem:[%s3132_s0 + %s2670_s7]]  }
  0x31   :  { %s2849_s20 = sld [smem:[%s3132_s0 + %s2671_s15]]  }
  0x33   :  { %3151 = sst [smem:[#allocation16_spill]] %s2834_s27 }
  0x34   :  { %s2854_s27 = sld [smem:[%s3132_s0 + %s2672_s22]]  }
  0x35 LB: > { %s2316_s1 = sadd.s32 4294967295, %s2639_s28   ;;  %p2320_p0 = scmp.ge.s32.totalorder %s2639_s28, 1  ;;  %s2639_s28 = sphi %s2856_s28, %s75_s28  }
  0x36   : > { %p911_p1 = scmp.lt.s32.totalorder %s2639_s28, 3 }
  0x38   : > { %p912_p2 = pnand %p2320_p0, %p911_p1 }
  0x39   : > { %p998_p3 = scmp.lt.s32.totalorder (!%p912_p2), %s2316_s1, 1  ;;  %s2676_s10 = smov (!%p912_p2), 96  }
  0x3a   : > { %915 = sbr.rel (%p912_p2) target bundleno = 5908 (0x1714), region = 148  ;;  %s2677_s11 = smov (!%p912_p2), 1  }
  0x3b   : > { %s2678_s15 = smov (!%p912_p2), 2   ;;  %s2679_s16 = smov (!%p912_p2), 4  }
  0x3c   : > { %s2680_s18 = smov (!%p912_p2), 121   ;;  %s2681_s23 = smov (!%p912_p2), 80  }
  0x3d   : > { %s2682_s26 = smov (!%p912_p2), 112  }
  0x3f   : > { %s3170_s1 = smov (!%p998_p3, %s2316_s1), 1  ;;  %vm1031_vm0 = vcmask 261120   ;;  %v2569_v7 = vld [vmem:[%s2719_s25 + $0x8] sm:$0xff]   ;;  %v2673_v8 = vmov 0.0   ;;  %vm2674_vm1 = vmmov 0   ;;  %v2570_v9 = vld [vmem:[%s2719_s25] sm:$0xff]  }
  0x40   : > { %s2867_s0 = sshll.u32 %s3170_s1, 3  ;;  %2427 = vmatprep.subr.bf16.mxu0 %v2673_v8  ;;  %2431 = vmatprep.mubr.msk.bf16.mxu0 %vm2674_vm1, %v2673_v8  ;;  %v2324_v14 = vld [vmem:[%s2709_s17] ss:$0 sm:$0xff]  ;;  %v2571_v20 = vld [vmem:[%s2729_s3 + $0x18] sm:$0xff]   ;;  %v2572_v21 = vld [vmem:[%s2729_s3 + $0x10] sm:$0xff]   ;;  %vm1160_vm2 = vcmask 523264   ;;  %s1004_s22 = scalar_lea.vmem %s2699_s9, %s3170_s1 }
  0x41   : > { %s1001_s2 = scalar_lea.vmem %s2694_s5, %s2867_s0  ;;  %2428 = vmatpush3.bf16.msra.mxu0 %v2569_v7  ;;  %2435 = vmatprep.subr.bf16.mxu1 %v2673_v8  ;;  %v2325_v16 = vld [vmem:[%s2714_s21] ss:$0 sm:$0xff]  ;;  %v2573_v22 = vld [vmem:[%s2729_s3 + $0x8] sm:$0xff]   ;;  %v2577_v62 = vld [vmem:[%s2764_s12 + $0x38] sm:$0xff]   ;;  %vm1374_vm3 = vcmask 130048   ;;  %v2675_v63 = vmov 0   ;;  %s1008_s7 = scalar_lea.vmem %s2704_s13, %s2867_s0 }
  0x42   : > { %v2871_v0 = vld [vmem:[%s1001_s2] sm:$0xff]  ;;  %2429 = vmatprep.subr.bf16.mxu0 %v2673_v8  ;;  %2443 = vmatprep.mubr.msk.bf16.mxu1 %vm2674_vm1, %v2673_v8  ;;  %v2575_v50 = vld [vmem:[%s2749_s24 + $0x8] sm:$0xff]   ;;  %v2581_v7 = vld [vmem:[%s2764_s12 + $0x18] sm:$0xff]   ;;  %vm1481_vm7 = vcmask 64512   ;;  %s2683_s1 = smov 64   ;;  %vm1499_vm8 = vcmask 1043456  }
  0x43   : > { %v1032_v1 = vsel %vm1031_vm0, %v2871_v0, 0.0  ;;  %2436 = vmatpush3.bf16.msra.mxu1 %v2571_v20  ;;  %v2574_v23 = vld [vmem:[%s2729_s3] sm:$0xff]   ;;  %2568 = vset.pattern.permute.xlu0 %v2675_v63  ;;  %s2684_s2 = smov 48   ;;  %vm1860_vm9 = vcmask 1040384   ;;  %vm1876_vm10 = vcmask 1046528  }
  0x44   : > { %1033 = vadd.xlane.f32.xlu0 %v1032_v1  ;;  %2437 = vmatprep.subr.bf16.mxu1 %v2673_v8  ;;  %v2326_v24 = vld [vmem:[%s2724_s29] ss:$0 sm:$0xff]  ;;  %v2578_v1 = vld [vmem:[%s2764_s12 + $0x30] sm:$0xff]  }
  0x45   : > { %2430 = vmatpush3.bf16.msra.mxu0 %v2570_v9  ;;  %v2331_v36 = vld [vmem:[%s2734_s8] ss:$0 sm:$0xff]  ;;  %v2947_v9 = vsel %vm1374_vm3, %v2581_v7, 0 }
  0x46   : > { %2447 = vmatprep.subr.bf16.mxu0 %v2673_v8  ;;  %v2576_v51 = vld [vmem:[%s2749_s24] sm:$0xff]  }
  0x47   : > { %2438 = vmatpush3.bf16.msra.mxu1 %v2572_v21  ;;  %v2337_v56 = vld [vmem:[%s2739_s14] ss:$0 sm:$0xff] }
  0x48   : > { %2439 = vmatprep.subr.bf16.mxu1 %v2673_v8  ;;  %v2338_v58 = vld [vmem:[%s2744_s19] ss:$0 sm:$0xff] }
  0x49   : > { %v1295_v20 = vld [vmem:[%s1008_s7] sm:$0xff]  ;;  %s3154_s7 = sld [smem:[#allocation2_spill]] }
  0x4b   : > { %2440 = vmatpush3.bf16.msra.mxu1 %v2573_v22 }
  0x4c   : > { %2441 = vmatprep.subr.bf16.mxu1 %v2673_v8 }
  0x4f   : > { %2442 = vmatpush3.bf16.msra.mxu1 %v2574_v23 }
  0x50   : > { %2455 = vmatprep.subr.bf16.mxu1 %v2673_v8 }
  0xcd   : > { %v1034_v2 = vpop.xlane.xlu0 %1033 }
  0xce   : > { %v1036_v3 = vmul.f32 0.03125, %v1034_v2  ;;  %v2929_v2 = vsel %vm1374_vm3, %v2578_v1, 0 }
  0xd0   : > { %v1037_v4 = vsub.f32 %v2871_v0, %v1036_v3  ;;  %v2579_v3 = vld [vmem:[%s2764_s12 + $0x28] sm:$0xff]  }
  0xd2   : > { %v1038_v5 = vmul.f32 %v1037_v4, %v1037_v4 }
  0xd4   : > { %v1039_v6 = vsel %vm1031_vm0, %v1038_v5, 0.0  ;;  %v2580_v5 = vld [vmem:[%s2764_s12 + $0x20] sm:$0xff]  }
  0xd5   : > { %1040 = vadd.xlane.f32.xlu0 %v1039_v6  ;;  %v2941_v6 = vsel %vm1374_vm3, %v2580_v5, 0 }
 0x15e   : > { %v1041_v10 = vpop.xlane.xlu0 %1040 }
 0x15f   : > { %v1042_v11 = vmul.f32 0.03125, %v1041_v10  ;;  %v2582_v10 = vld [vmem:[%s2764_s12 + $0x10] sm:$0xff]  }
 0x161   : > { %v1043_v12 = vadd.f32 1e-05, %v1042_v11  ;;  %v2953_v11 = vsel %vm1374_vm3, %v2582_v10, 0 }
 0x163   : > { %2599 = vrsqrt.f32 %v1043_v12  ;;  %v2583_v12 = vld [vmem:[%s2764_s12 + $0x8] sm:$0xff]  }
 0x170   : > { %v2600_v13 = vpop.eup %2599 }
 0x171   : > { %v1045_v15 = vmul.f32 %v2600_v13, %v1037_v4  ;;  %v2935_v4 = vsel %vm1374_vm3, %v2579_v3, 0  ;;  %v2959_v13 = vsel %vm1374_vm3, %v2583_v12, 0 }
 0x173   : > { %v1052_v17 = vmul.f32 %v2324_v14, %v1045_v15  ;;  %v2584_v14 = vld [vmem:[%s2764_s12] sm:$0xff]  }
 0x174   : > { %v2965_v15 = vsel %vm1374_vm3, %v2584_v14, 0 }
 0x175   : > { %v1059_v18 = vadd.f32 %v2325_v16, %v1052_v17 }
 0x177   : > { %v1060_v19 = vpack.c.bf16 %v1059_v18, %v1059_v18 }
 0x179   : > { %2432 = vmatmul.mubr.msk.bf16.vlgmr.msra.gmra.mxu0 %vm1031_vm0, %v1060_v19 }
 0x17a   : > { %2451 = vmatprep.mubr.msk.bf16.mxu0 %vm2674_vm1, %v2673_v8  ;;  %2448 = vmatpush3.bf16.msra.mxu0 %v2575_v50 }
 0x17b   : > { %2449 = vmatprep.subr.bf16.mxu0 %v2673_v8 }
 0x17e   : > { %2450 = vmatpush3.bf16.msra.mxu0 %v2576_v51 }
 0x17f   : > { %1405 = vmatprep.subr.bf16.mxu0 %v2675_v63 }
 0x239   : > { %v1116_v25 = vpop.f32.mrf.mxu0 }
 0x23a   : > { %v1117_v26 = vadd.f32 %v2326_v24, %v1116_v25 }
 0x23b   : > { %v2433_v27 = vpop.f32.mrf.mxu0 }
 0x23c   : > { %v2330_v28 = vmul.f32 -1.442695, %v1117_v26 }
 0x23d   : > { %v1119_v29 = vpop.f32.mrf.mxu0 }
 0x23e   : > { %2601 = vpow2.f32 %v2330_v28  ;;  %v1311_v28 = vlaneseq }
 0x23f   : > { %v2434_v30 = vpop.f32.mrf.mxu0 }
 0x240   : > { %v2981_v29 = vshrl.u32 %v1311_v28, 7 }
 0x242   : > { %v1313_v30 = vsub.s32 7, %v2981_v29 }
 0x24b   : > { %v2602_v31 = vpop.eup %2601 }
 0x24c   : > { %v1125_v32 = vadd.f32 1.0, %v2602_v31  ;;  %v1447_v31 = vand.u32 1, %v1313_v30 }
 0x24e   : > { %2603 = vrcp.f32 %v1125_v32  ;;  %vm2984_vm4 = vcmp.eq.s32.totalorder %v1447_v31, 1 }
 0x25b   : > { %v2604_v33 = vpop.eup %2603 }
 0x25c   : > { %v1128_v34 = vmul.f32 %v2604_v33, %v1117_v26 }
 0x25e   : > { %v1129_v35 = vpack.c.bf16 %v1128_v34, %v1128_v34 }
 0x260   : > { %2444 = vmatmul.mubr.msk.bf16.vlgmr.msra.gmra.mxu1 %vm1160_vm2, %v1129_v35  ;;  %v1456_v35 = vshra.s32 %v1313_v30, 1 }
 0x261   : > { %2457 = vmatprep.mubr.msk.bf16.mxu1 %vm2674_vm1, %v2673_v8 }
 0x320   : > { %v1198_v37 = vpop.f32.mrf.mxu1 }
 0x321   : > { %v1199_v38 = vadd.f32 %v2331_v36, %v1198_v37  ;;  %v2991_v36 = vand.u32 1, %v1456_v35  ;;  %v2586_v35 = vld [vmem:[%s2754_s30] sm:$0xff]  }
 0x322   : > { %v2445_v39 = vpop.f32.mrf.mxu1 }
 0x323   : > { %v1204_v40 = vmul.f32 0.5, %v1199_v38  ;;  %vm1458_vm5 = vcmp.eq.s32.totalorder %v2991_v36, 1  ;;  %v1466_v39 = vshra.s32 %v1313_v30, 2 }
 0x324   : > { %v1201_v41 = vpop.f32.mrf.mxu1 }
 0x325   : > { %v2906_v42 = vadd.f32 %v1204_v40, %v2871_v0  ;;  %v2922_v0 = vsel %vm1374_vm3, %v2577_v62, 0  ;;  %v2997_v40 = vand.u32 1, %v1466_v39 }
 0x326   : > { %v2446_v43 = vpop.f32.mrf.mxu1 }
 0x327   : > { %v1208_v44 = vsel %vm1031_vm0, %v2906_v42, 0.0  ;;  %vm1468_vm6 = vcmp.eq.s32.totalorder %v2997_v40, 1 }
 0x328   : > { %1209 = vadd.xlane.f32.xlu1 %v1208_v44  ;;  %v2342_v44 = vld [vmem:[%s1004_s22] ss:$0 sm:$0xff]  ;;  %s3159_s22 = sld [smem:[#allocation10_spill]] }
 0x3b1   : > { %v1210_v45 = vpop.xlane.xlu1 %1209 }
 0x3b2   : > { %v1211_v46 = vmul.f32 0.03125, %v1210_v45 }
 0x3b4   : > { %v1212_v47 = vsub.f32 %v2906_v42, %v1211_v46 }
 0x3b6   : > { %v1213_v48 = vmul.f32 %v1212_v47, %v1212_v47 }
 0x3b8   : > { %v1214_v49 = vsel %vm1031_vm0, %v1213_v48, 0.0 }
 0x3b9   : > { %1215 = vadd.xlane.f32.xlu1 %v1214_v49 }
 0x442   : > { %v1216_v52 = vpop.xlane.xlu1 %1215 }
 0x443   : > { %v1217_v53 = vmul.f32 0.03125, %v1216_v52 }
 0x445   : > { %v1218_v54 = vadd.f32 1e-05, %v1217_v53 }
 0x447   : > { %2605 = vrsqrt.f32 %v1218_v54 }
 0x454   : > { %v2606_v55 = vpop.eup %2605 }
 0x455   : > { %v1220_v57 = vmul.f32 %v2606_v55, %v1212_v47 }
 0x457   : > { %v1227_v59 = vmul.f32 %v2337_v56, %v1220_v57 }
 0x459   : > { %v1234_v60 = vadd.f32 %v2338_v58, %v1227_v59 }
 0x45b   : > { %v1235_v61 = vpack.c.bf16 %v1234_v60, %v1234_v60 }
 0x45d   : > { %2452 = vmatmul.mubr.msk.bf16.vlgmr.msra.gmra.mxu0 %vm1031_vm0, %v1235_v61 }
 0x45e   : > { %1437 = vmatprep.mubr.bf16.mxu0 %v2675_v63  ;;  %1406 = vmatpush1.bf16.xpose.msra.mxu0 %v2922_v0 }
 0x45f   : > { %1407 = vmatprep.subr.bf16.mxu0 %v2675_v63 }
 0x466   : > { %1408 = vmatpush1.bf16.xpose.msra.mxu0 %v2929_v2 }
 0x467   : > { %1409 = vmatprep.subr.bf16.mxu0 %v2675_v63 }
 0x46e   : > { %1410 = vmatpush1.bf16.xpose.msra.mxu0 %v2935_v4 }
 0x46f   : > { %1411 = vmatprep.subr.bf16.mxu0 %v2675_v63 }
 0x476   : > { %1412 = vmatpush1.bf16.xpose.msra.mxu0 %v2941_v6 }
 0x477   : > { %1413 = vmatprep.subr.bf16.mxu0 %v2675_v63 }
 0x47e   : > { %1414 = vmatpush1.bf16.xpose.msra.mxu0 %v2947_v9 }
 0x47f   : > { %1415 = vmatprep.subr.bf16.mxu0 %v2675_v63 }
 0x486   : > { %1416 = vmatpush1.bf16.xpose.msra.mxu0 %v2953_v11 }
 0x487   : > { %1417 = vmatprep.subr.bf16.mxu0 %v2675_v63 }
 0x48e   : > { %1418 = vmatpush1.bf16.xpose.msra.mxu0 %v2959_v13 }
 0x48f   : > { %1419 = vmatprep.subr.bf16.mxu0 %v2675_v63 }
 0x496   : > { %1420 = vmatpush1.bf16.xpose.msra.mxu0 %v2965_v15 }
 0x497   : > { %1435 = vmatprep.subr.bf16.mxu0 %v2675_v63 }
 0x51d   : > { %v1289_v16 = vpop.f32.mrf.mxu0 }
 0x51e   : > { %v2969_v17 = vpack.c.bf16 %v1289_v16, %v1289_v16 }
 0x51f   : > { %v2453_v18 = vpop.f32.mrf.mxu0 }
 0x520   : > { %1372 = vrot.lane.b32.xlu0 %v2969_v17, %s2676_s10  ;;  %s2685_s10 = smov 16  }
 0x521   : > { %v1292_v19 = vpop.f32.mrf.mxu0 }
 0x523   : > { %v2454_v21 = vpop.f32.mrf.mxu0 }
 0x524   : > { %1299 = vperm.xlu0 %2568, %v1295_v20  }
 0x592   : > { %v1373_v22 = vpop.permute.xlu0 %1372 }
 0x593   : > { %v1403_v23 = vsel %vm1374_vm3, %v1373_v22, 0 }
 0x594   : > { %1436 = vmatpush2.bf16.xpose.msra.mxu0 %v1403_v23 }
 0x595   : > { %2461 = vmatprep.subr.bf16.mxu0 %v2673_v8 }
 0x59b   : > { %2352 = vmatmul.mubr.msk.bf16.vlgmr.msra.gmra.mxu0 %vm1374_vm3, %v2969_v17 }
 0x59c   : > { %2463 = vmatprep.mubr.msk.bf16.mxu0 %vm2674_vm1, %v2673_v8 }
 0x59f   : > { %v1300_v45 = vpop.permute.xlu0 %1299 }
 0x5a0   : > { %v1308_v46 = vmul.f32 %v2342_v44, %v1300_v45  ;;  %v2359_v45 = vld [vmem:[%s3154_s7] ss:$0 sm:$0xff]  ;;  %s3164_s7 = sld [smem:[#allocation14_spill]] }
 0x5a2   : > { %v2343_v47 = vadd.f32 -1.0, %v1308_v46 }
 0x5a4   : > { %v3005_v48 = vmul.f32 1e+09, %v2343_v47 }
 0x65b   : > { %v1439_v24 = vpop.f32.mrf.mxu0 }
 0x65c   : > { %1452 = vrot.lane.b32.xlu1 %v1439_v24, %s2677_s11 }
 0x65d   : > { %v1441_v25 = vpop.f32.mrf.mxu0 }
 0x65e   : > { %v1446_v49 = vadd.f32 %v1441_v25, %v3005_v48 }
 0x65f   : > { %v1443_v26 = vpop.f32.mrf.mxu0 }
 0x661   : > { %v1444_v27 = vpop.f32.mrf.mxu0 }
 0x6ce   : > { %v1453_v33 = vpop.permute.xlu1 %1452 }
 0x6cf   : > { %v1455_v34 = vsel %vm2984_vm4, %v1439_v24, %v1453_v33 }
 0x6d0   : > { %1462 = vrot.lane.b32.xlu1 %v1455_v34, %s2678_s15 }
 0x742   : > { %v1463_v37 = vpop.permute.xlu1 %1462 }
 0x743   : > { %v1465_v38 = vsel %vm1458_vm5, %v1455_v34, %v1463_v37  ;;  %v2585_v34 = vld [vmem:[%s2754_s30 + $0x8] sm:$0xff]  }
 0x744   : > { %1472 = vrot.lane.b32.xlu1 %v1465_v38, %s2679_s16 }
 0x7b6   : > { %v1473_v41 = vpop.permute.xlu1 %1472 }
 0x7b7   : > { %v1475_v43 = vsel %vm1468_vm6, %v1465_v38, %v1473_v41 }
 0x7b8   : > { %1477 = vrot.lane.b32.xlu1 %v1475_v43, %s2680_s18 }
 0x82a   : > { %v1478_v50 = vpop.permute.xlu1 %1477 }
 0x82b   : > { %v1480_v51 = vadd.f32 %v1478_v50, %v1446_v49 }
 0x82d   : > { %v1482_v52 = vsel %vm1481_vm7, %v1480_v51, -inf }
 0x82e   : > { %1483 = vmax.xlane.f32.xlu1 %v1482_v52 }
 0x83f   : > { %1543 = vrot.lane.b32.xlu1 %v2969_v17, %s2681_s23  ;;  %s3160_s23 = sld [smem:[#allocation7_spill]] }
 0x843   : > { %1545 = vrot.lane.b32.xlu1 %v2969_v17, %s2682_s26  ;;  %s3161_s26 = sld [smem:[#allocation8_spill]] }
 0x8b7   : > { %v1484_v53 = vpop.xlane.xlu1 %1483 }
 0x8b8   : > { %v1485_v54 = vsub.f32 %v1480_v51, %v1484_v53 }
 0x8ba   : > { %v1486_v55 = vmul.f32 1.442695, %v1485_v54 }
 0x8bc   : > { %2607 = vpow2.f32 %v1486_v55 }
 0x8c9   : > { %v2608_v56 = vpop.eup %2607 }
 0x8ca   : > { %v1488_v57 = vsel %vm1481_vm7, %v2608_v56, 0.0 }
 0x8cb   : > { %1489 = vadd.xlane.f32.xlu0 %v1488_v57 }
 0x8e1   : > { %1494 = vrot.lane.b32.xlu0 %v2969_v17, %s2683_s1 }
 0x954   : > { %v1490_v58 = vpop.xlane.xlu0 %1489 }
 0x955   : > { %2609 = vrcp.f32 %v1490_v58 }
 0x958   : > { %v1495_v59 = vpop.permute.xlu0 %1494 }
 0x959   : > { %v1501_v60 = vsel %vm1499_vm8, %v1495_v59, 0 }
 0x95a   : > { %2456 = vmatpush3.bf16.msra.mxu1 %v1501_v60 }
 0x95b   : > { %1553 = vmatprep.subr.bf16.mxu1 %v2675_v63 }
 0x962   : > { %v2610_v61 = vpop.eup %2609 }
 0x963   : > { %v1492_v62 = vmul.f32 %v2610_v61, %v2608_v56 }
 0x965   : > { %v1493_v1 = vpack.c.bf16 %v1492_v62, %v1492_v62 }
 0x967   : > { %2458 = vmatmul.mubr.msk.bf16.vlgmr.msra.gmra.mxu1 %vm1481_vm7, %v1493_v1 }
 0x968   : > { %1554 = vmatpush1.bf16.xpose.msra.mxu1 %v2922_v0  ;;  %1585 = vmatprep.mubr.bf16.mxu1 %v2675_v63  ;;  %v1544_v0 = vpop.permute.xlu1 %1543 }
 0x969   : > { %1555 = vmatprep.subr.bf16.mxu1 %v2675_v63 }
 0x96c   : > { %v1546_v3 = vpop.permute.xlu1 %1545 }
 0x970   : > { %1556 = vmatpush1.bf16.xpose.msra.mxu1 %v2929_v2  ;;  %v1551_v2 = vsel %vm1374_vm3, %v1544_v0, 0 }
 0x971   : > { %1557 = vmatprep.subr.bf16.mxu1 %v2675_v63 }
 0x978   : > { %1558 = vmatpush1.bf16.xpose.msra.mxu1 %v2935_v4 }
 0x979   : > { %1559 = vmatprep.subr.bf16.mxu1 %v2675_v63 }
 0x980   : > { %1560 = vmatpush1.bf16.xpose.msra.mxu1 %v2941_v6 }
 0x981   : > { %1561 = vmatprep.subr.bf16.mxu1 %v2675_v63 }
 0x988   : > { %1562 = vmatpush1.bf16.xpose.msra.mxu1 %v2947_v9 }
 0x989   : > { %1563 = vmatprep.subr.bf16.mxu1 %v2675_v63 }
 0x990   : > { %1564 = vmatpush1.bf16.xpose.msra.mxu1 %v2953_v11 }
 0x991   : > { %1565 = vmatprep.subr.bf16.mxu1 %v2675_v63 }
 0x998   : > { %1566 = vmatpush1.bf16.xpose.msra.mxu1 %v2959_v13 }
 0x999   : > { %1567 = vmatprep.subr.bf16.mxu1 %v2675_v63 }
 0x9a0   : > { %1568 = vmatpush1.bf16.xpose.msra.mxu1 %v2965_v15 }
 0x9a1   : > { %1583 = vmatprep.subr.bf16.mxu1 %v2675_v63 }
 0x9a8   : > { %1584 = vmatpush2.bf16.xpose.msra.mxu1 %v1551_v2 }
 0x9a9   : > { %2475 = vmatprep.subr.bf16.mxu1 %v2673_v8 }
 0x9af   : > { %2354 = vmatmul.mubr.msk.bf16.vlgmr.msra.gmra.mxu1 %vm1374_vm3, %v1546_v3 }
 0x9b0   : > { %2479 = vmatprep.mubr.msk.bf16.mxu1 %vm2674_vm1, %v2673_v8 }
 0xa27   : > { %v1537_v4 = vpop.f32.mrf.mxu1 }
 0xa29   : > { %v2459_v5 = vpop.f32.mrf.mxu1 }
 0xa2b   : > { %v1540_v6 = vpop.f32.mrf.mxu1 }
 0xa2d   : > { %v2460_v7 = vpop.f32.mrf.mxu1 }
 0xa6f   : > { %v1587_v9 = vpop.f32.mrf.mxu1 }
 0xa70   : > { %1596 = vrot.lane.b32.xlu0 %v1587_v9, %s2677_s11  ;;  %s3155_s11 = sld [smem:[#allocation5_spill]] }
 0xa71   : > { %v1589_v63 = vpop.f32.mrf.mxu1 }
 0xa72   : > { %v1594_v19 = vadd.f32 %v1589_v63, %v3005_v48 }
 0xa73   : > { %v1591_v10 = vpop.f32.mrf.mxu1 }
 0xa75   : > { %v1592_v11 = vpop.f32.mrf.mxu1 }
 0xa76   : > { %v2588_v57 = vld [vmem:[%s3155_s11] sm:$0xff]  }
 0xae2   : > { %v1597_v12 = vpop.permute.xlu0 %1596 }
 0xae3   : > { %v1599_v13 = vsel %vm2984_vm4, %v1587_v9, %v1597_v12 }
 0xae4   : > { %1601 = vrot.lane.b32.xlu1 %v1599_v13, %s2678_s15  ;;  %s3156_s15 = sld [smem:[#allocation3_spill]] }
 0xaea   : > { %v2360_v62 = vld [vmem:[%s3156_s15] ss:$0 sm:$0xff]  ;;  %s3166_s15 = sld [smem:[#allocation13_spill]] }
 0xb56   : > { %v1602_v14 = vpop.permute.xlu1 %1601 }
 0xb57   : > { %v1604_v15 = vsel %vm1458_vm5, %v1599_v13, %v1602_v14 }
 0xb58   : > { %1606 = vrot.lane.b32.xlu0 %v1604_v15, %s2679_s16  ;;  %s3157_s16 = sld [smem:[#allocation4_spill]] }
 0xb5e   : > { %v2361_v0 = vld [vmem:[%s3157_s16] ss:$0 sm:$0xff]  ;;  %s3167_s16 = sld [smem:[#allocation16_spill]] }
 0xbca   : > { %v1607_v16 = vpop.permute.xlu0 %1606 }
 0xbcb   : > { %v1609_v18 = vsel %vm1468_vm6, %v1604_v15, %v1607_v16  ;;  %v2589_v15 = vld [vmem:[%s3159_s22 + $0x18] sm:$0xff]   ;;  %v2590_v16 = vld [vmem:[%s3159_s22 + $0x10] sm:$0xff]  }
 0xbcc   : > { %1611 = vrot.lane.b32.xlu1 %v1609_v18, %s2680_s18  ;;  %s3158_s18 = sld [smem:[#allocation6_spill]]  ;;  %v2591_v18 = vld [vmem:[%s3159_s22 + $0x8] sm:$0xff]  }
 0xbd2   : > { %v2362_v5 = vld [vmem:[%s3158_s18] ss:$0 sm:$0xff]  ;;  %s3168_s18 = sld [smem:[#allocation15_spill]] }
 0xc3e   : > { %v1612_v20 = vpop.permute.xlu1 %1611 }
 0xc3f   : > { %v1614_v21 = vadd.f32 %v1612_v20, %v1594_v19  ;;  %v2592_v19 = vld [vmem:[%s3159_s22] sm:$0xff]   ;;  %v1864_v20 = vsub.s32 0, %v2981_v29 }
 0xc41   : > { %v1615_v22 = vsel %vm1481_vm7, %v1614_v21, -inf }
 0xc42   : > { %1616 = vmax.xlane.f32.xlu0 %v1615_v22  ;;  %v1856_v22 = vld [vmem:[%s3160_s23] sm:$0x7]  ;;  %s1012_s23 = scalar_lea.vmem %s2854_s27, %s2867_s0 }
 0xc58   : > { %1627 = vrot.lane.b32.xlu0 %v2969_v17, %s2684_s2  ;;  %s3163_s2 = sld [smem:[#allocation11_spill]] }
 0xccb   : > { %v1617_v23 = vpop.xlane.xlu0 %1616 }
 0xccc   : > { %v1618_v24 = vsub.f32 %v1614_v21, %v1617_v23  ;;  %v1870_v21 = vsub.s32 1, %v2981_v29  ;;  %v1880_v23 = vsub.s32 2, %v2981_v29 }
 0xcce   : > { %v1619_v25 = vmul.f32 1.442695, %v1618_v24 }
 0xccf   : > { %v1628_v26 = vpop.permute.xlu0 %1627 }
 0xcd0   : > { %2611 = vpow2.f32 %v1619_v25  ;;  %v1633_v27 = vsel %vm1499_vm8, %v1628_v26, 0  ;;  %v1865_v26 = vrot.slane %v1856_v22, %v1864_v20 }
 0xcd1   : > { %2462 = vmatpush3.bf16.msra.mxu0 %v1633_v27  ;;  %v1871_v27 = vrot.slane %v1856_v22, %v1870_v21 }
 0xcd2   : > { %2467 = vmatprep.subr.bf16.mxu0 %v2673_v8 }
 0xcdd   : > { %v2612_v28 = vpop.eup %2611 }
 0xcde   : > { %v1621_v30 = vsel %vm1481_vm7, %v2612_v28, 0.0 }
 0xcdf   : > { %1622 = vadd.xlane.f32.xlu1 %v1621_v30 }
 0xd68   : > { %v1623_v31 = vpop.xlane.xlu1 %1622 }
 0xd69   : > { %2613 = vrcp.f32 %v1623_v31  ;;  %v1881_v31 = vrot.slane %v1856_v22, %v1880_v23 }
 0xd76   : > { %v2614_v32 = vpop.eup %2613 }
 0xd77   : > { %v1625_v17 = vmul.f32 %v2614_v32, %v2612_v28 }
 0xd79   : > { %v1626_v33 = vpack.c.bf16 %v1625_v17, %v1625_v17 }
 0xd7b   : > { %2464 = vmatmul.mubr.msk.bf16.vlgmr.msra.gmra.mxu0 %vm1481_vm7, %v1626_v33 }
 0xd7c   : > { %2471 = vmatprep.mubr.msk.bf16.mxu0 %vm2674_vm1, %v2673_v8  ;;  %2468 = vmatpush3.bf16.msra.mxu0 %v2585_v34 }
 0xd7d   : > { %2469 = vmatprep.subr.bf16.mxu0 %v2673_v8 }
 0xd80   : > { %2470 = vmatpush3.bf16.msra.mxu0 %v2586_v35 }
 0xd81   : > { %2483 = vmatprep.subr.bf16.mxu0 %v2673_v8 }
 0xe3b   : > { %v1669_v36 = vpop.f32.mrf.mxu0 }
 0xe3c   : > { %1676 = vrot.lane.b32.xlu1 %v1669_v36, %s2685_s10  ;;  %s3165_s10 = sld [smem:[#allocation12_spill]] }
 0xe3d   : > { %v2465_v37 = vpop.f32.mrf.mxu0 }
 0xe3e   : > { %v2367_v37 = vld [vmem:[%s3161_s26] ss:$0 sm:$0xff] }
 0xe3f   : > { %v1672_v38 = vpop.f32.mrf.mxu0 }
 0xe41   : > { %v2466_v39 = vpop.f32.mrf.mxu0 }
 0xeae   : > { %v1677_v40 = vpop.permute.xlu1 %1676 }
 0xeaf   : > { %v1679_v41 = vsel %vm1374_vm3, %v1537_v4, %v1677_v40 }
 0xeb0   : > { %v1680_v43 = vpack.c.bf16 %v1679_v41, %v1679_v41 }
 0xeb2   : > { %2472 = vmatmul.mubr.msk.bf16.vlgmr.msra.gmra.mxu0 %vm1031_vm0, %v1680_v43 }
 0xeb3   : > { %2491 = vmatprep.mubr.msk.bf16.mxu0 %vm2674_vm1, %v2673_v8  ;;  %2484 = vmatpush3.bf16.msra.mxu0 %v2589_v15 }
 0xeb4   : > { %2485 = vmatprep.subr.bf16.mxu0 %v2673_v8 }
 0xeb7   : > { %2486 = vmatpush3.bf16.msra.mxu0 %v2590_v16 }
 0xeb8   : > { %2487 = vmatprep.subr.bf16.mxu0 %v2673_v8 }
 0xebb   : > { %2488 = vmatpush3.bf16.msra.mxu0 %v2591_v18 }
 0xebc   : > { %2489 = vmatprep.subr.bf16.mxu0 %v2673_v8 }
 0xebf   : > { %2490 = vmatpush3.bf16.msra.mxu0 %v2592_v19 }
 0xf72   : > { %v1734_v44 = vpop.f32.mrf.mxu0 }
 0xf73   : > { %v1740_v46 = vadd.f32 %v1734_v44, %v2906_v42  ;;  %v2587_v42 = vld [vmem:[%s3155_s11 + $0x8] sm:$0xff]  }
 0xf74   : > { %v2473_v47 = vpop.f32.mrf.mxu0  ;;  %2476 = vmatpush3.bf16.msra.mxu1 %v2587_v42 }
 0xf75   : > { %v3068_v48 = vadd.f32 %v2359_v45, %v1740_v46  ;;  %2477 = vmatprep.subr.bf16.mxu1 %v2673_v8 }
 0xf76   : > { %v1737_v49 = vpop.f32.mrf.mxu0 }
 0xf77   : > { %v1751_v50 = vsel %vm1031_vm0, %v3068_v48, 0.0 }
 0xf78   : > { %1752 = vadd.xlane.f32.xlu0 %v1751_v50  ;;  %v2474_v51 = vpop.f32.mrf.mxu0  ;;  %2478 = vmatpush3.bf16.msra.mxu1 %v2588_v57  ;;  %v2375_v50 = vld [vmem:[%s3163_s2] ss:$0 sm:$0xff] }
 0xf79   : > { %2495 = vmatprep.subr.bf16.mxu1 %v2673_v8 }
0x1001   : > { %v1753_v52 = vpop.xlane.xlu0 %1752 }
0x1002   : > { %v1754_v53 = vmul.f32 0.03125, %v1753_v52 }
0x1004   : > { %v1755_v54 = vsub.f32 %v3068_v48, %v1754_v53 }
0x1006   : > { %v1756_v55 = vmul.f32 %v1755_v54, %v1755_v54 }
0x1008   : > { %v1757_v56 = vsel %vm1031_vm0, %v1756_v55, 0.0 }
0x1009   : > { %1758 = vadd.xlane.f32.xlu1 %v1757_v56 }
0x1092   : > { %v1759_v58 = vpop.xlane.xlu1 %1758 }
0x1093   : > { %v1760_v59 = vmul.f32 0.03125, %v1759_v58 }
0x1095   : > { %v1761_v60 = vadd.f32 1e-05, %v1760_v59 }
0x1097   : > { %2615 = vrsqrt.f32 %v1761_v60 }
0x10a4   : > { %v2616_v61 = vpop.eup %2615 }
0x10a5   : > { %v1763_v1 = vmul.f32 %v2616_v61, %v1755_v54  ;;  %v2593_v61 = vld [vmem:[%s3164_s7 + $0x8] sm:$0xff]  }
0x10a7   : > { %v1770_v2 = vmul.f32 %v2360_v62, %v1763_v1  ;;  %v2594_v62 = vld [vmem:[%s3164_s7] sm:$0xff]  }
0x10a9   : > { %v1777_v3 = vadd.f32 %v2361_v0, %v1770_v2 }
0x10ab   : > { %v1778_v4 = vpack.c.bf16 %v1777_v3, %v1777_v3  ;;  %v2376_v3 = vld [vmem:[%s3165_s10] ss:$0 sm:$0xff] }
0x10ad   : > { %2480 = vmatmul.mubr.msk.bf16.vlgmr.msra.gmra.mxu1 %vm1031_vm0, %v1778_v4 }
0x10ae   : > { %2499 = vmatprep.mubr.msk.bf16.mxu1 %vm2674_vm1, %v2673_v8  ;;  %2496 = vmatpush3.bf16.msra.mxu1 %v2593_v61 }
0x10af   : > { %2497 = vmatprep.subr.bf16.mxu1 %v2673_v8 }
0x10b2   : > { %2498 = vmatpush3.bf16.msra.mxu1 %v2594_v62 }
0x10b3   : > { %2503 = vmatprep.subr.bf16.mxu1 %v2673_v8 }
0x116d   : > { %v1839_v6 = vpop.f32.mrf.mxu1 }
0x116e   : > { %v1840_v7 = vadd.f32 %v2362_v5, %v1839_v6  ;;  %v2377_v5 = vld [vmem:[%s3166_s15] ss:$0 sm:$0xff] }
0x116f   : > { %v2481_v9 = vpop.f32.mrf.mxu1 }
0x1170   : > { %v2366_v63 = vmul.f32 -1.442695, %v1840_v7 }
0x1171   : > { %v1842_v10 = vpop.f32.mrf.mxu1 }
0x1172   : > { %2617 = vpow2.f32 %v2366_v63  ;;  %v2595_v63 = vld [vmem:[%s3167_s16 + $0x18] sm:$0xff]   ;;  %v2596_v10 = vld [vmem:[%s3167_s16 + $0x10] sm:$0xff]  }
0x1173   : > { %v2482_v11 = vpop.f32.mrf.mxu1 }
0x1174   : > { %v2597_v11 = vld [vmem:[%s3167_s16 + $0x8] sm:$0xff]  }
0x117f   : > { %v2618_v12 = vpop.eup %2617 }
0x1180   : > { %v1848_v13 = vadd.f32 1.0, %v2618_v12  ;;  %v2598_v12 = vld [vmem:[%s3167_s16] sm:$0xff]  }
0x1182   : > { %2619 = vrcp.f32 %v1848_v13  ;;  %v2378_v13 = vld [vmem:[%s3168_s18] ss:$0 sm:$0xff] }
0x118f   : > { %v2620_v14 = vpop.eup %2619 }
0x1190   : > { %1852 = vrot.lane.b32.xlu0 %v2620_v14, %s2683_s1  ;;  %s3162_s1 = sld [smem:[#allocation9_spill]] }
0x1196   : > { %v2368_v38 = vld [vmem:[%s3162_s1] ss:$0 sm:$0xff] }
0x1202   : > { %v1853_v24 = vpop.permute.xlu0 %1852 }
0x1203   : > { %v1855_v25 = vmul.f32 %v1853_v24, %v1840_v7 }
0x1205   : > { %v1858_v28 = vrot.slane %v1855_v25, 7  ;;  %v1874_v30 = vrot.slane %v1855_v25, 1  ;;  %v1872_v34 = vmul.f32 %v1871_v27, %v1855_v25 }
0x1207   : > { %v1861_v32 = vsel %vm1860_vm9, 0.0, %v1858_v28  ;;  %v1877_v17 = vsel %vm1876_vm10, %v1874_v30, 0.0 }
0x1208   : > { %v1866_v33 = vmul.f32 %v1865_v26, %v1861_v32  ;;  %v1882_v36 = vmul.f32 %v1881_v31, %v1877_v17 }
0x120a   : > { %v1873_v35 = vadd.f32 %v1872_v34, %v1866_v33 }
0x120c   : > { %v1883_v29 = vadd.f32 %v1882_v36, %v1873_v35 }
0x120e   : > { %v1891_v39 = vmul.f32 %v2367_v37, %v1883_v29 }
0x1210   : > { %v1899_v40 = vadd.f32 %v2368_v38, %v1891_v39 }
0x1212   : > { %v2369_v41 = vmul.f32 -1.442695, %v1899_v40 }
0x1214   : > { %2621 = vpow2.f32 %v2369_v41 }
0x1221   : > { %v2622_v43 = vpop.eup %2621 }
0x1222   : > { %v1903_v44 = vadd.f32 1.0, %v2622_v43  ;;  %v2389_v43 = vld [vmem:[%s2844_s6] ss:$0 sm:$0xff] }
0x1224   : > { %2623 = vrcp.f32 %v1903_v44 }
0x1231   : > { %v2624_v45 = vpop.eup %2623 }
0x1232   : > { %v1906_v46 = vmul.f32 %v2624_v45, %v1899_v40  ;;  %v2390_v45 = vld [vmem:[%s2849_s20] ss:$0 sm:$0xff] }
0x1234   : > { %v1907_v47 = vpack.c.bf16 %v1906_v46, %v1906_v46 }
0x1236   : > { %2492 = vmatmul.mubr.msk.bf16.vlgmr.msra.gmra.mxu0 %vm1160_vm2, %v1907_v47 }
0x12f6   : > { %v1977_v49 = vpop.f32.mrf.mxu0 }
0x12f7   : > { %v1983_v51 = vadd.f32 %v1977_v49, %v3068_v48 }
0x12f8   : > { %v2493_v52 = vpop.f32.mrf.mxu0 }
0x12f9   : > { %v1991_v53 = vadd.f32 %v2375_v50, %v1983_v51 }
0x12fa   : > { %v1980_v54 = vpop.f32.mrf.mxu0 }
0x12fb   : > { %v2008_v55 = vsel %vm1031_vm0, %v1991_v53, 0.0 }
0x12fc   : > { %2009 = vadd.xlane.f32.xlu1 %v2008_v55  ;;  %v2494_v56 = vpop.f32.mrf.mxu0 }
0x1385   : > { %v2010_v42 = vpop.xlane.xlu1 %2009 }
0x1386   : > { %v2011_v57 = vmul.f32 0.03125, %v2010_v42 }
0x1388   : > { %v2012_v58 = vsub.f32 %v1991_v53, %v2011_v57 }
0x138a   : > { %v2013_v59 = vmul.f32 %v2012_v58, %v2012_v58 }
0x138c   : > { %v2014_v60 = vsel %vm1031_vm0, %v2013_v59, 0.0 }
0x138d   : > { %2015 = vadd.xlane.f32.xlu1 %v2014_v60 }
0x1416   : > { %v2016_v48 = vpop.xlane.xlu1 %2015 }
0x1417   : > { %v2017_v1 = vmul.f32 0.03125, %v2016_v48 }
0x1419   : > { %v2018_v0 = vadd.f32 1e-05, %v2017_v1 }
0x141b   : > { %2625 = vrsqrt.f32 %v2018_v0 }
0x1428   : > { %v2626_v2 = vpop.eup %2625 }
0x1429   : > { %v2020_v4 = vmul.f32 %v2626_v2, %v2012_v58 }
0x142b   : > { %v2027_v6 = vmul.f32 %v2376_v3, %v2020_v4 }
0x142d   : > { %v2034_v7 = vadd.f32 %v2377_v5, %v2027_v6 }
0x142f   : > { %v2035_v9 = vpack.c.bf16 %v2034_v7, %v2034_v7 }
0x1431   : > { %2500 = vmatmul.mubr.msk.bf16.vlgmr.msra.gmra.mxu1 %vm1031_vm0, %v2035_v9 }
0x1432   : > { %2511 = vmatprep.mubr.msk.bf16.mxu1 %vm2674_vm1, %v2673_v8  ;;  %2504 = vmatpush3.bf16.msra.mxu1 %v2595_v63 }
0x1433   : > { %2505 = vmatprep.subr.bf16.mxu1 %v2673_v8 }
0x1436   : > { %2506 = vmatpush3.bf16.msra.mxu1 %v2596_v10 }
0x1437   : > { %2507 = vmatprep.subr.bf16.mxu1 %v2673_v8 }
0x143a   : > { %2508 = vmatpush3.bf16.msra.mxu1 %v2597_v11 }
0x143b   : > { %2509 = vmatprep.subr.bf16.mxu1 %v2673_v8  ;;  %v2383_v8 = vld [vmem:[%s2839_s4] ss:$0 sm:$0xff] }
0x143e   : > { %2510 = vmatpush3.bf16.msra.mxu1 %v2598_v12 }
0x14f1   : > { %v2091_v14 = vpop.f32.mrf.mxu1 }
0x14f2   : > { %v2092_v15 = vadd.f32 %v2378_v13, %v2091_v14 }
0x14f3   : > { %v2501_v16 = vpop.f32.mrf.mxu1 }
0x14f4   : > { %v2382_v18 = vmul.f32 -1.442695, %v2092_v15 }
0x14f5   : > { %v2094_v19 = vpop.f32.mrf.mxu1 }
0x14f6   : > { %2627 = vpow2.f32 %v2382_v18 }
0x14f7   : > { %v2502_v20 = vpop.f32.mrf.mxu1 }
0x1503   : > { %v2628_v21 = vpop.eup %2627 }
0x1504   : > { %v2100_v22 = vadd.f32 1.0, %v2628_v21 }
0x1506   : > { %2629 = vrcp.f32 %v2100_v22 }
0x1513   : > { %v2630_v23 = vpop.eup %2629 }
0x1514   : > { %v2103_v24 = vmul.f32 %v2630_v23, %v2092_v15 }
0x1516   : > { %v2104_v25 = vpack.c.bf16 %v2103_v24, %v2103_v24 }
0x1518   : > { %2512 = vmatmul.mubr.msk.bf16.vlgmr.msra.gmra.mxu1 %vm1160_vm2, %v2104_v25 }
0x15d8   : > { %v2172_v26 = vpop.f32.mrf.mxu1 }
0x15d9   : > { %v2173_v27 = vadd.f32 %v2383_v8, %v2172_v26 }
0x15da   : > { %v2513_v28 = vpop.f32.mrf.mxu1 }
0x15db   : > { %v2178_v30 = vmul.f32 0.5, %v2173_v27 }
0x15dc   : > { %v2175_v31 = vpop.f32.mrf.mxu1 }
0x15dd   : > { %v2179_v32 = vadd.f32 %v2178_v30, %v1991_v53 }
0x15de   : > { %v2514_v17 = vpop.f32.mrf.mxu1 }
0x15df   : > { %v2182_v33 = vsel %vm1031_vm0, %v2179_v32, 0.0 }
0x15e0   : > { %2183 = vadd.xlane.f32.xlu1 %v2182_v33 }
0x1669   : > { %v2184_v34 = vpop.xlane.xlu1 %2183 }
0x166a   : > { %v2185_v35 = vmul.f32 0.03125, %v2184_v34 }
0x166c   : > { %v2186_v36 = vsub.f32 %v2179_v32, %v2185_v35 }
0x166e   : > { %v2187_v37 = vmul.f32 %v2186_v36, %v2186_v36 }
0x1670   : > { %v2188_v29 = vsel %vm1031_vm0, %v2187_v37, 0.0 }
0x1671   : > { %2189 = vadd.xlane.f32.xlu1 %v2188_v29 }
0x16fa   : > { %v2190_v38 = vpop.xlane.xlu1 %2189 }
0x16fb   : > { %v2191_v39 = vmul.f32 0.03125, %v2190_v38 }
0x16fd   : > { %v2192_v40 = vadd.f32 1e-05, %v2191_v39 }
0x16ff   : > { %2631 = vrsqrt.f32 %v2192_v40 }
0x170c   : > { %v2632_v41 = vpop.eup %2631 }
0x170d   : > { %v2194_v44 = vmul.f32 %v2632_v41, %v2186_v36 }
0x170f   : > { %v2201_v46 = vmul.f32 %v2389_v43, %v2194_v44 }
0x1711   : > { %v2208_v47 = vadd.f32 %v2390_v45, %v2201_v46 }
0x1713   : > { %2209 = vst.msk [vmem:[%s1012_s23] sm:$0xff] %vm1031_vm0, %v2208_v47 }
0x1714 PF: > { %s75_s28 = sadd.s32 1, %s2639_s28  }
0x1715   : > { %p72_p4 = scmp.ge.s32.totalorder %s75_s28, 4  }
0x1717   :  { %74 = sbr.rel (!%p72_p4) target bundleno = 53 (0x35), region = 216 }

</bundles_post_ra>
